<compile_context>
chip_gen: v7x
topology: tpu7x:2x2x1
jax: 0.10.0
libtpu: 0.0.40
codegen_flags: <defaults>
</compile_context>

<pallas_src>
import functools

import jax
import jax.numpy as jnp
from jax import lax
from jax.experimental import pallas as pl
from jax.experimental.pallas import tpu as pltpu


def _round_up(x, m):
    return (x + m - 1) // m * m


# ------------------------------ fused kernel ------------------------------- #

def _fused_kernel(a_ref, x_ref, p_ref, wc_ref, pb_ref, w1_ref, b1_ref,
                  w2_ref, b2_ref, out_ref, h_buf, pool_ref,
                  *, K, alpha, c, num_classes, tm, a_resident):
    """grid = (K hops [outer, sequential], row tiles [inner]).

    h_buf   : (2, Np, Fp) bf16  hop-state double buffer (slot k%2 read, (k+1)%2 written)
    pool_ref: (Gp, Fp)    f32   running P @ (alpha*x + c * sum_k A^k x)
    """
    k = pl.program_id(0)
    i = pl.program_id(1)
    n_tiles = pl.num_programs(1)

    row0 = pl.multiple_of(i * tm, tm)
    rows = pl.ds(row0, tm)

    @pl.when((k == 0) & (i == 0))
    def _init():
        pool_ref[...] = jnp.zeros_like(pool_ref)

    # A rows for this step (bf16 MXU lhs). Resident: slice the cached full A.
    a_rows = a_ref[rows, :] if a_resident else a_ref[...]
    p_cols = p_ref[...]                          # (Gp, tm) bf16 pooling one-hot cols

    def _tile_epilogue(new_h, *, first_hop):
        # new_h : (tm, Fp) f32 rows of A^{k+1} X for this tile.
        if K > 1:
            @pl.when(k < K - 1)
            def _stash():
                # dynamic slot index on the scratch ref's leading dim
                h_buf[(k + 1) % 2, rows, :] = new_h.astype(jnp.bfloat16)
        contrib = c * new_h
        if first_hop:
            contrib = contrib + alpha * x_ref[rows, :].astype(jnp.float32)
        # fuse global_add_pool per hop: pool_feat += P[:, rows] @ contrib
        pool_ref[...] += jnp.dot(p_cols, contrib.astype(jnp.bfloat16),
                                 preferred_element_type=jnp.float32)

    @pl.when(k == 0)
    def _hop_first():
        # hop 0 uses X directly as the rhs (no init copy into h_buf)
        _tile_epilogue(jnp.dot(a_rows, x_ref[...],
                               preferred_element_type=jnp.float32),
                       first_hop=True)

    if K > 1:
        @pl.when(k > 0)
        def _hop_rest():
            _tile_epilogue(jnp.dot(a_rows, h_buf[k % 2],
                                   preferred_element_type=jnp.float32),
                           first_hop=False)

    # Very last grid step: conv Linear on pooled features + MLP head + log_softmax.
    @pl.when((k == K - 1) & (i == n_tiles - 1))
    def _head():
        pooled = pool_ref[...].astype(jnp.bfloat16)                   # (Gp, Fp)
        conv = (jnp.dot(pooled, wc_ref[...],
                        preferred_element_type=jnp.float32) + pb_ref[...])
        z = jnp.dot(conv.astype(jnp.bfloat16), w1_ref[...],
                    preferred_element_type=jnp.float32) + b1_ref[...]
        z = jnp.maximum(z, 0.0)
        # TODO(synk): F.dropout implemented as identity (inference, training=False)
        logits = jnp.dot(z.astype(jnp.bfloat16), w2_ref[...],
                         preferred_element_type=jnp.float32) + b2_ref[...]
        cls = lax.broadcasted_iota(jnp.int32, logits.shape, 1)
        logits = jnp.where(cls < num_classes, logits, jnp.float32(-1e30))
        m = jnp.max(logits, axis=-1, keepdims=True)
        s = logits - m
        lse = jnp.log(jnp.sum(jnp.exp(s), axis=-1, keepdims=True))
        out_ref[...] = s - lse


# ------------------------------ glue (plain JAX) ---------------------------- #

def build_norm_adj(edge_index, edge_weight, num_nodes, norm_type="sym"):
    """Dense GCN-style normalized adjacency with self-loops (A_hat @ X propagates)."""
    # TODO(synk): assumes edge_index has no pre-existing self-loops (else double-count);
    # dense N x N adjacency built in the wrapper (O(N^2) HBM).
    src, dst = edge_index[0], edge_index[1]
    a = jnp.zeros((num_nodes, num_nodes), jnp.float32)
    a = a.at[dst, src].add(edge_weight)              # message src -> dst
    a = a + jnp.eye(num_nodes, dtype=jnp.float32)    # self loops
    deg = jnp.sum(a, axis=1)
    if norm_type == "sym":
        dinv = jnp.where(deg > 0, lax.rsqrt(deg), 0.0)
        a = dinv[:, None] * a * dinv[None, :]
    else:                                            # random-walk normalization
        dinv = jnp.where(deg > 0, 1.0 / deg, 0.0)
        a = dinv[:, None] * a
    return a


def _pad2(x, r, c):
    out = jnp.zeros((r, c), x.dtype)
    return out.at[:x.shape[0], :x.shape[1]].set(x)


def net_ctgc_forward(params, x, edge_index, edge_weight, batch, num_graphs, *,
                     K, alpha, aggr_type, norm_type):
    n, f_in = x.shape
    nhid = params["conv_w"].shape[1]
    ncls = params["lin2_w"].shape[1]

    a_hat = build_norm_adj(edge_index, edge_weight, n, norm_type)

    # Lane/sublane-dense padded shapes.
    # tm=128 unless the graph is large (avoids f32-epilogue vreg spills on v5e).
    tm = 256 if n >= 512 else 128
    n_p = _round_up(n, tm)
    f_p = _round_up(f_in, 128)
    h_p = _round_up(nhid, 128)
    c_p = _round_up(ncls, 128)
    g_p = _round_up(num_graphs, 8)

    # Keep A fully resident in VMEM when its (double-buffered) bf16 footprint is
    # comfortably under the smallest scoped VMEM budget (v7x); otherwise stream
    # (tm, n_p) row tiles (A then gets re-read K times from HBM).
    a_resident = (2 * n_p * n_p * 2) <= 24 * 1024 * 1024

    a_p = _pad2(a_hat, n_p, n_p).astype(jnp.bfloat16)     # dominant array in bf16
    x_p = _pad2(x.astype(jnp.float32), n_p, f_p).astype(jnp.bfloat16)
    pool_mat = (batch[None, :] ==
                jnp.arange(num_graphs, dtype=batch.dtype)[:, None]).astype(jnp.float32)
    counts = jnp.sum(pool_mat, axis=1)                    # nodes per graph
    p_p = _pad2(pool_mat, g_p, n_p).astype(jnp.bfloat16)

    wc = _pad2(params["conv_w"].astype(jnp.float32), f_p, h_p).astype(jnp.bfloat16)
    w1 = _pad2(params["lin1_w"].astype(jnp.float32), h_p, h_p).astype(jnp.bfloat16)
    w2 = _pad2(params["lin2_w"].astype(jnp.float32), h_p, c_p).astype(jnp.bfloat16)
    # conv bias pooled analytically: global_add_pool of a constant per-node bias
    # is nodes_per_graph * bias.
    pb = _pad2(counts[:, None] * params["conv_b"].reshape(1, -1).astype(jnp.float32),
               g_p, h_p)
    b1 = _pad2(params["lin1_b"].reshape(1, -1).astype(jnp.float32), 1, h_p)
    b2 = _pad2(params["lin2_b"].reshape(1, -1).astype(jnp.float32), 1, c_p)

    # fold scalars: feat = alpha*x + c * sum_{k=1..K} A^k x
    c_scale = (1.0 - alpha) / K if aggr_type == "mean" else (1.0 - alpha)

    n_tiles = n_p // tm
    kern = functools.partial(_fused_kernel, K=int(K), alpha=float(alpha),
                             c=float(c_scale), num_classes=int(ncls), tm=tm,
                             a_resident=a_resident)

    a_spec = (pl.BlockSpec((n_p, n_p), lambda k, i: (0, 0)) if a_resident
              else pl.BlockSpec((tm, n_p), lambda k, i: (i, 0)))

    flops = int(2 * K * n_p * n_p * f_p + 2 * K * g_p * n_p * f_p
                + 2 * g_p * f_p * h_p + 2 * g_p * h_p * h_p + 2 * g_p * h_p * c_p)
    a_hbm_reads = 1 if a_resident else K
    bytes_accessed = int(a_hbm_reads * n_p * n_p * 2 + n_p * f_p * 2
                         + K * g_p * n_p * 2
                         + (f_p * h_p + h_p * h_p + h_p * c_p) * 2
                         + (g_p * h_p + h_p + c_p) * 4 + g_p * c_p * 4)

    out_p = pl.pallas_call(
        kern,
        out_shape=jax.ShapeDtypeStruct((g_p, c_p), jnp.float32),
        grid_spec=pltpu.PrefetchScalarGridSpec(
            num_scalar_prefetch=0,
            grid=(K, n_tiles),                                  # hops outer, rows inner
            in_specs=[
                a_spec,                                         # A_hat (bf16)
                pl.BlockSpec((n_p, f_p), lambda k, i: (0, 0)),  # X bf16, resident
                pl.BlockSpec((g_p, tm), lambda k, i: (0, i)),   # pooling one-hot cols
                pl.BlockSpec((f_p, h_p), lambda k, i: (0, 0)),  # conv W (bf16)
                pl.BlockSpec((g_p, h_p), lambda k, i: (0, 0)),  # pooled conv bias (f32)
                pl.BlockSpec((h_p, h_p), lambda k, i: (0, 0)),  # lin1 W (bf16)
                pl.BlockSpec((1, h_p), lambda k, i: (0, 0)),    # lin1 b (f32)
                pl.BlockSpec((h_p, c_p), lambda k, i: (0, 0)),  # lin2 W (bf16)
                pl.BlockSpec((1, c_p), lambda k, i: (0, 0)),    # lin2 b (f32)
            ],
            out_specs=pl.BlockSpec((g_p, c_p), lambda k, i: (0, 0)),
            scratch_shapes=[
                pltpu.VMEM((2, n_p, f_p), jnp.bfloat16),        # hop state (double buf)
                pltpu.VMEM((g_p, f_p), jnp.float32),            # pooled feature acc
            ]),
        compiler_params=pltpu.CompilerParams(
            # both axes carry dependencies through shared VMEM scratch -> sequential
            dimension_semantics=("arbitrary", "arbitrary"),
            vmem_limit_bytes=64 * 1024 * 1024),
        cost_estimate=pl.CostEstimate(flops=flops,
                                      transcendentals=int(g_p * c_p + g_p),
                                      bytes_accessed=bytes_accessed),
    )(a_p, x_p, p_p, wc, pb, w1, b1, w2, b2)

    return out_p[:num_graphs, :ncls]


# --------------------------- pure-JAX reference ----------------------------- #

def net_ctgc_reference(params, x, edge_index, edge_weight, batch, num_graphs, *,
                       K, alpha, aggr_type, norm_type):
    a_hat = build_norm_adj(edge_index, edge_weight, x.shape[0], norm_type)
    h = x
    acc = jnp.zeros_like(x)
    for _ in range(K):
        h = a_hat @ h
        acc = acc + h
    agg = acc / K if aggr_type == "mean" else acc
    feat = alpha * x + (1.0 - alpha) * agg
    hconv = feat @ params["conv_w"] + params["conv_b"]
    pool_mat = (batch[None, :] ==
                jnp.arange(num_graphs, dtype=batch.dtype)[:, None]).astype(jnp.float32)
    pooled = pool_mat @ hconv
    z = jnp.maximum(pooled @ params["lin1_w"] + params["lin1_b"], 0.0)
    logits = z @ params["lin2_w"] + params["lin2_b"]
    return jax.nn.log_softmax(logits, axis=-1)


# ----------------------------------- main ----------------------------------- #

if __name__ == "__main__":
    N, F_IN, NHID, NUM_CLASSES, NUM_GRAPHS = 16, 8, 32, 4, 2
    K, ALPHA = 3, 0.1
    AGGR_TYPE, NORM_TYPE = "mean", "sym"

    key = jax.random.PRNGKey(0)
    kx, kcw, kcb, k1w, k1b, k2w, k2b = jax.random.split(key, 7)

    params = {
        "conv_w": 0.1 * jax.random.normal(kcw, (F_IN, NHID), jnp.float32),
        "conv_b": 0.1 * jax.random.normal(kcb, (1, NHID), jnp.float32),
        "lin1_w": 0.1 * jax.random.normal(k1w, (NHID, NHID), jnp.float32),
        "lin1_b": 0.1 * jax.random.normal(k1b, (1, NHID), jnp.float32),
        "lin2_w": 0.1 * jax.random.normal(k2w, (NHID, NUM_CLASSES), jnp.float32),
        "lin2_b": 0.1 * jax.random.normal(k2b, (1, NUM_CLASSES), jnp.float32),
    }

    # deterministic synthetic batch of 2 ring graphs with 8 nodes each
    nodes_per_graph = N // NUM_GRAPHS
    srcs, dsts = [], []
    for g in range(NUM_GRAPHS):
        off = g * nodes_per_graph
        for i in range(nodes_per_graph):
            j = (i + 1) % nodes_per_graph
            srcs += [off + i, off + j]
            dsts += [off + j, off + i]
    edge_index = jnp.array([srcs, dsts], dtype=jnp.int32)
    edge_weight = jnp.ones((edge_index.shape[1],), jnp.float32)
    batch = jnp.repeat(jnp.arange(NUM_GRAPHS, dtype=jnp.int32), nodes_per_graph)
    x = jax.random.normal(kx, (N, F_IN), jnp.float32)

    out = net_ctgc_forward(params, x, edge_index, edge_weight, batch, NUM_GRAPHS,
                           K=K, alpha=ALPHA, aggr_type=AGGR_TYPE,
                           norm_type=NORM_TYPE)
    out = jax.block_until_ready(out)
    assert out.shape == (NUM_GRAPHS, NUM_CLASSES)
    # rows of log_softmax must (numerically) sum to 1 after exp
    assert jnp.allclose(jnp.exp(out).sum(-1), 1.0, atol=1e-5)

    ref = net_ctgc_reference(params, x, edge_index, edge_weight, batch, NUM_GRAPHS,
                             K=K, alpha=ALPHA, aggr_type=AGGR_TYPE,
                             norm_type=NORM_TYPE)
    assert jnp.allclose(out, ref, atol=5e-2, rtol=5e-2), (out, ref)
    print("KERNEL_OK")
</pallas_src>

<mosaic_0001>
module attributes {stable_mosaic.version = 11 : i64} {
  func.func @_fused_kernel(%arg0: i32, %arg1: i32, %arg2: memref<128x128xbf16, #tpu.memory_space<vmem>>, %arg3: memref<128x128xbf16, #tpu.memory_space<vmem>>, %arg4: memref<8x128xbf16, #tpu.memory_space<vmem>>, %arg5: memref<128x128xbf16, #tpu.memory_space<vmem>>, %arg6: memref<8x128xf32, #tpu.memory_space<vmem>>, %arg7: memref<128x128xbf16, #tpu.memory_space<vmem>>, %arg8: memref<1x128xf32, #tpu.memory_space<vmem>>, %arg9: memref<128x128xbf16, #tpu.memory_space<vmem>>, %arg10: memref<1x128xf32, #tpu.memory_space<vmem>>, %arg11: memref<8x128xf32, #tpu.memory_space<vmem>>, %arg12: memref<2x128x128xbf16, #tpu.memory_space<vmem>>, %arg13: memref<8x128xf32, #tpu.memory_space<vmem>>) attributes {dimension_semantics = [#tpu.dimension_semantics<arbitrary>, #tpu.dimension_semantics<arbitrary>], iteration_bounds = array<i64: 3, 1>, scalar_prefetch = 0 : i64, scratch_operands = 2 : i64, tpu.core_type = #tpu.core_type<tc>, window_params = [{pipeline_mode = #tpu.pipeline_mode<synchronous>, transform_indices = @transform_0, window_bounds = array<i64: 128, 128>}, {pipeline_mode = #tpu.pipeline_mode<synchronous>, transform_indices = @transform_1, window_bounds = array<i64: 128, 128>}, {transform_indices = @transform_2, window_bounds = array<i64: 8, 128>}, {pipeline_mode = #tpu.pipeline_mode<synchronous>, transform_indices = @transform_3, window_bounds = array<i64: 128, 128>}, {pipeline_mode = #tpu.pipeline_mode<synchronous>, transform_indices = @transform_4, window_bounds = array<i64: 8, 128>}, {pipeline_mode = #tpu.pipeline_mode<synchronous>, transform_indices = @transform_5, window_bounds = array<i64: 128, 128>}, {pipeline_mode = #tpu.pipeline_mode<synchronous>, transform_indices = @transform_6, window_bounds = array<i64: 1, 128>}, {pipeline_mode = #tpu.pipeline_mode<synchronous>, transform_indices = @transform_7, window_bounds = array<i64: 128, 128>}, {pipeline_mode = #tpu.pipeline_mode<synchronous>, transform_indices = @transform_8, window_bounds = array<i64: 1, 128>}, {pipeline_mode = #tpu.pipeline_mode<synchronous>, transform_indices = @transform_9, window_bounds = array<i64: 8, 128>}]} {
    %c128_i32 = arith.constant 128 : i32
    %0 = arith.muli %arg1, %c128_i32 : i32
    %1 = tpu.assume_multiple %0, 128 : i32
    %c0_i32 = arith.constant 0 : i32
    %2 = arith.cmpi eq, %arg0, %c0_i32 : i32
    %c0_i32_0 = arith.constant 0 : i32
    %3 = arith.cmpi eq, %arg1, %c0_i32_0 : i32
    %4 = arith.andi %2, %3 : i1
    %5 = arith.extui %4 : i1 to i32
    %c0_i32_1 = arith.constant 0 : i32
    %6 = arith.cmpi ne, %5, %c0_i32_1 : i32
    scf.if %6 {
      %cst = arith.constant 0.000000e+00 : f32
      %21 = vector.broadcast %cst : f32 to vector<8x128xf32>
      %c0_10 = arith.constant 0 : index
      %c0_11 = arith.constant 0 : index
      %22 = vector.load %arg13[%c0_10, %c0_11] : memref<8x128xf32, #tpu.memory_space<vmem>>, vector<8x128xf32>
      tpu.vector_store %arg13[%c0_10, %c0_11], %21 {strides = array<i32>} : memref<8x128xf32, #tpu.memory_space<vmem>>, vector<8x128xf32>,
    } else {
    }
    %7 = arith.index_cast %1 : i32 to index
    %c0 = arith.constant 0 : index
    %8 = vector.load %arg2[%7, %c0] : memref<128x128xbf16, #tpu.memory_space<vmem>>, vector<128x128xbf16>
    %c0_2 = arith.constant 0 : index
    %c0_3 = arith.constant 0 : index
    %9 = vector.load %arg4[%c0_2, %c0_3] : memref<8x128xbf16, #tpu.memory_space<vmem>>, vector<8x128xbf16>
    %c0_i32_4 = arith.constant 0 : i32
    %10 = arith.cmpi eq, %arg0, %c0_i32_4 : i32
    %11 = arith.extui %10 : i1 to i32
    %c0_i32_5 = arith.constant 0 : i32
    %12 = arith.cmpi ne, %11, %c0_i32_5 : i32
    scf.if %12 {
      %c0_10 = arith.constant 0 : index
      %c0_11 = arith.constant 0 : index
      %21 = vector.load %arg3[%c0_10, %c0_11] : memref<128x128xbf16, #tpu.memory_space<vmem>>, vector<128x128xbf16>
      %cst = arith.constant dense<0.000000e+00> : vector<128x128xf32>
      %22 = tpu.matmul %8, %21, %cst {dimension_numbers = #tpu.dot_dimension_numbers<[1], [0], [0], [1], [0, 0, 1, 1], [], []>} : vector<128x128xbf16>, vector<128x128xbf16>, vector<128x128xf32> -> vector<128x128xf32>
      %c2_i32_12 = arith.constant 2 : i32
      %23 = arith.cmpi slt, %arg0, %c2_i32_12 : i32
      %24 = arith.extui %23 : i1 to i32
      %c0_i32_13 = arith.constant 0 : i32
      %25 = arith.cmpi ne, %24, %c0_i32_13 : i32
      scf.if %25 {
        %39 = arith.truncf %22 : vector<128x128xf32> to vector<128x128xbf16>
        %c1_i32 = arith.constant 1 : i32
        %40 = arith.addi %arg0, %c1_i32 : i32
        %c2_i32_22 = arith.constant 2 : i32
        %c0_i32_23 = arith.constant 0 : i32
        %41 = arith.cmpi eq, %c2_i32_22, %c0_i32_23 : i32
        %c1_i32_24 = arith.constant 1 : i32
        %42 = arith.select %41, %c1_i32_24, %c2_i32_22 : i32
        %43 = arith.remsi %40, %42 : i32
        %c0_i32_25 = arith.constant 0 : i32
        %44 = arith.cmpi ne, %43, %c0_i32_25 : i32
        %c0_i32_26 = arith.constant 0 : i32
        %45 = arith.cmpi slt, %43, %c0_i32_26 : i32
        %c0_i32_27 = arith.constant 0 : i32
        %46 = arith.cmpi slt, %42, %c0_i32_27 : i32
        %47 = arith.xori %45, %46 : i1
        %48 = arith.andi %47, %44 : i1
        %49 = arith.addi %43, %42 : i32
        %50 = arith.select %48, %49, %43 : i32
        %51 = arith.index_cast %50 : i32 to index
        %52 = arith.index_cast %1 : i32 to index
        %c0_28 = arith.constant 0 : index
        %53 = vector.load %arg12[%51, %52, %c0_28] : memref<2x128x128xbf16, #tpu.memory_space<vmem>>, vector<1x128x128xbf16>
        %54 = vector.shape_cast %53 : vector<1x128x128xbf16> to vector<128x128xbf16>
        %55 = vector.shape_cast %39 : vector<128x128xbf16> to vector<1x128x128xbf16>
        tpu.vector_store %arg12[%51, %52, %c0_28], %55 {strides = array<i32>} : memref<2x128x128xbf16, #tpu.memory_space<vmem>>, vector<1x128x128xbf16>,
      } else {
      }
      %cst_14 = arith.constant 3.000000e-01 : f32
      %26 = vector.broadcast %cst_14 : f32 to vector<128x128xf32>
      %27 = arith.mulf %26, %22 : vector<128x128xf32>
      %28 = arith.index_cast %1 : i32 to index
      %c0_15 = arith.constant 0 : index
      %29 = vector.load %arg3[%28, %c0_15] : memref<128x128xbf16, #tpu.memory_space<vmem>>, vector<128x128xbf16>
      %30 = arith.extf %29 : vector<128x128xbf16> to vector<128x128xf32>
      %cst_16 = arith.constant 1.000000e-01 : f32
      %31 = vector.broadcast %cst_16 : f32 to vector<128x128xf32>
      %32 = arith.mulf %31, %30 : vector<128x128xf32>
      %33 = arith.addf %27, %32 : vector<128x128xf32>
      %c0_17 = arith.constant 0 : index
      %c0_18 = arith.constant 0 : index
      %34 = vector.load %arg13[%c0_17, %c0_18] : memref<8x128xf32, #tpu.memory_space<vmem>>, vector<8x128xf32>
      %35 = arith.truncf %33 : vector<128x128xf32> to vector<128x128xbf16>
      %cst_19 = arith.constant dense<0.000000e+00> : vector<8x128xf32>
      %36 = tpu.matmul %9, %35, %cst_19 {dimension_numbers = #tpu.dot_dimension_numbers<[1], [0], [0], [1], [0, 0, 1, 1], [], []>} : vector<8x128xbf16>, vector<128x128xbf16>, vector<8x128xf32> -> vector<8x128xf32>
      %37 = arith.addf %34, %36 : vector<8x128xf32>
      %c0_20 = arith.constant 0 : index
      %c0_21 = arith.constant 0 : index
      %38 = vector.load %arg13[%c0_20, %c0_21] : memref<8x128xf32, #tpu.memory_space<vmem>>, vector<8x128xf32>
      tpu.vector_store %arg13[%c0_20, %c0_21], %37 {strides = array<i32>} : memref<8x128xf32, #tpu.memory_space<vmem>>, vector<8x128xf32>,
    } else {
    }
    %c0_i32_6 = arith.constant 0 : i32
    %13 = arith.cmpi sgt, %arg0, %c0_i32_6 : i32
    %14 = arith.extui %13 : i1 to i32
    %c0_i32_7 = arith.constant 0 : i32
    %15 = arith.cmpi ne, %14, %c0_i32_7 : i32
    scf.if %15 {
      %c2_i32_10 = arith.constant 2 : i32
      %c0_i32_11 = arith.constant 0 : i32
      %21 = arith.cmpi eq, %c2_i32_10, %c0_i32_11 : i32
      %c1_i32 = arith.constant 1 : i32
      %22 = arith.select %21, %c1_i32, %c2_i32_10 : i32
      %23 = arith.remsi %arg0, %22 : i32
      %c0_i32_12 = arith.constant 0 : i32
      %24 = arith.cmpi ne, %23, %c0_i32_12 : i32
      %c0_i32_13 = arith.constant 0 : i32
      %25 = arith.cmpi slt, %23, %c0_i32_13 : i32
      %c0_i32_14 = arith.constant 0 : i32
      %26 = arith.cmpi slt, %22, %c0_i32_14 : i32
      %27 = arith.xori %25, %26 : i1
      %28 = arith.andi %27, %24 : i1
      %29 = arith.addi %23, %22 : i32
      %30 = arith.select %28, %29, %23 : i32
      %31 = arith.index_cast %30 : i32 to index
      %c0_15 = arith.constant 0 : index
      %c0_16 = arith.constant 0 : index
      %32 = vector.load %arg12[%31, %c0_15, %c0_16] : memref<2x128x128xbf16, #tpu.memory_space<vmem>>, vector<1x128x128xbf16>
      %33 = vector.shape_cast %32 : vector<1x128x128xbf16> to vector<128x128xbf16>
      %cst = arith.constant dense<0.000000e+00> : vector<128x128xf32>
      %34 = tpu.matmul %8, %33, %cst {dimension_numbers = #tpu.dot_dimension_numbers<[1], [0], [0], [1], [0, 0, 1, 1], [], []>} : vector<128x128xbf16>, vector<128x128xbf16>, vector<128x128xf32> -> vector<128x128xf32>
      %c2_i32_17 = arith.constant 2 : i32
      %35 = arith.cmpi slt, %arg0, %c2_i32_17 : i32
      %36 = arith.extui %35 : i1 to i32
      %c0_i32_18 = arith.constant 0 : i32
      %37 = arith.cmpi ne, %36, %c0_i32_18 : i32
      scf.if %37 {
        %45 = arith.truncf %34 : vector<128x128xf32> to vector<128x128xbf16>
        %c1_i32_25 = arith.constant 1 : i32
        %46 = arith.addi %arg0, %c1_i32_25 : i32
        %c2_i32_26 = arith.constant 2 : i32
        %c0_i32_27 = arith.constant 0 : i32
        %47 = arith.cmpi eq, %c2_i32_26, %c0_i32_27 : i32
        %c1_i32_28 = arith.constant 1 : i32
        %48 = arith.select %47, %c1_i32_28, %c2_i32_26 : i32
        %49 = arith.remsi %46, %48 : i32
        %c0_i32_29 = arith.constant 0 : i32
        %50 = arith.cmpi ne, %49, %c0_i32_29 : i32
        %c0_i32_30 = arith.constant 0 : i32
        %51 = arith.cmpi slt, %49, %c0_i32_30 : i32
        %c0_i32_31 = arith.constant 0 : i32
        %52 = arith.cmpi slt, %48, %c0_i32_31 : i32
        %53 = arith.xori %51, %52 : i1
        %54 = arith.andi %53, %50 : i1
        %55 = arith.addi %49, %48 : i32
        %56 = arith.select %54, %55, %49 : i32
        %57 = arith.index_cast %56 : i32 to index
        %58 = arith.index_cast %1 : i32 to index
        %c0_32 = arith.constant 0 : index
        %59 = vector.load %arg12[%57, %58, %c0_32] : memref<2x128x128xbf16, #tpu.memory_space<vmem>>, vector<1x128x128xbf16>
        %60 = vector.shape_cast %59 : vector<1x128x128xbf16> to vector<128x128xbf16>
        %61 = vector.shape_cast %45 : vector<128x128xbf16> to vector<1x128x128xbf16>
        tpu.vector_store %arg12[%57, %58, %c0_32], %61 {strides = array<i32>} : memref<2x128x128xbf16, #tpu.memory_space<vmem>>, vector<1x128x128xbf16>,
      } else {
      }
      %cst_19 = arith.constant 3.000000e-01 : f32
      %38 = vector.broadcast %cst_19 : f32 to vector<128x128xf32>
      %39 = arith.mulf %38, %34 : vector<128x128xf32>
      %c0_20 = arith.constant 0 : index
      %c0_21 = arith.constant 0 : index
      %40 = vector.load %arg13[%c0_20, %c0_21] : memref<8x128xf32, #tpu.memory_space<vmem>>, vector<8x128xf32>
      %41 = arith.truncf %39 : vector<128x128xf32> to vector<128x128xbf16>
      %cst_22 = arith.constant dense<0.000000e+00> : vector<8x128xf32>
      %42 = tpu.matmul %9, %41, %cst_22 {dimension_numbers = #tpu.dot_dimension_numbers<[1], [0], [0], [1], [0, 0, 1, 1], [], []>} : vector<8x128xbf16>, vector<128x128xbf16>, vector<8x128xf32> -> vector<8x128xf32>
      %43 = arith.addf %40, %42 : vector<8x128xf32>
      %c0_23 = arith.constant 0 : index
      %c0_24 = arith.constant 0 : index
      %44 = vector.load %arg13[%c0_23, %c0_24] : memref<8x128xf32, #tpu.memory_space<vmem>>, vector<8x128xf32>
      tpu.vector_store %arg13[%c0_23, %c0_24], %43 {strides = array<i32>} : memref<8x128xf32, #tpu.memory_space<vmem>>, vector<8x128xf32>,
    } else {
    }
    %c2_i32 = arith.constant 2 : i32
    %16 = arith.cmpi eq, %arg0, %c2_i32 : i32
    %c0_i32_8 = arith.constant 0 : i32
    %17 = arith.cmpi eq, %arg1, %c0_i32_8 : i32
    %18 = arith.andi %16, %17 : i1
    %19 = arith.extui %18 : i1 to i32
    %c0_i32_9 = arith.constant 0 : i32
    %20 = arith.cmpi ne, %19, %c0_i32_9 : i32
    scf.if %20 {
      %c0_10 = arith.constant 0 : index
      %c0_11 = arith.constant 0 : index
      %21 = vector.load %arg13[%c0_10, %c0_11] : memref<8x128xf32, #tpu.memory_space<vmem>>, vector<8x128xf32>
      %22 = arith.truncf %21 : vector<8x128xf32> to vector<8x128xbf16>
      %c0_12 = arith.constant 0 : index
      %c0_13 = arith.constant 0 : index
      %23 = vector.load %arg5[%c0_12, %c0_13] : memref<128x128xbf16, #tpu.memory_space<vmem>>, vector<128x128xbf16>
      %cst = arith.constant dense<0.000000e+00> : vector<8x128xf32>
      %24 = tpu.matmul %22, %23, %cst {dimension_numbers = #tpu.dot_dimension_numbers<[1], [0], [0], [1], [0, 0, 1, 1], [], []>} : vector<8x128xbf16>, vector<128x128xbf16>, vector<8x128xf32> -> vector<8x128xf32>
      %c0_14 = arith.constant 0 : index
      %c0_15 = arith.constant 0 : index
      %25 = vector.load %arg6[%c0_14, %c0_15] : memref<8x128xf32, #tpu.memory_space<vmem>>, vector<8x128xf32>
      %26 = arith.addf %24, %25 : vector<8x128xf32>
      %27 = arith.truncf %26 : vector<8x128xf32> to vector<8x128xbf16>
      %c0_16 = arith.constant 0 : index
      %c0_17 = arith.constant 0 : index
      %28 = vector.load %arg7[%c0_16, %c0_17] : memref<128x128xbf16, #tpu.memory_space<vmem>>, vector<128x128xbf16>
      %cst_18 = arith.constant dense<0.000000e+00> : vector<8x128xf32>
      %29 = tpu.matmul %27, %28, %cst_18 {dimension_numbers = #tpu.dot_dimension_numbers<[1], [0], [0], [1], [0, 0, 1, 1], [], []>} : vector<8x128xbf16>, vector<128x128xbf16>, vector<8x128xf32> -> vector<8x128xf32>
      %c0_19 = arith.constant 0 : index
      %c0_20 = arith.constant 0 : index
      %30 = vector.load %arg8[%c0_19, %c0_20] : memref<1x128xf32, #tpu.memory_space<vmem>>, vector<1x128xf32>
      %31 = vector.broadcast %30 : vector<1x128xf32> to vector<8x128xf32>
      %32 = arith.addf %29, %31 : vector<8x128xf32>
      %cst_21 = arith.constant 0.000000e+00 : f32
      %33 = vector.broadcast %cst_21 : f32 to vector<8x128xf32>
      %34 = arith.maximumf %32, %33 : vector<8x128xf32>
      %35 = arith.truncf %34 : vector<8x128xf32> to vector<8x128xbf16>
      %c0_22 = arith.constant 0 : index
      %c0_23 = arith.constant 0 : index
      %36 = vector.load %arg9[%c0_22, %c0_23] : memref<128x128xbf16, #tpu.memory_space<vmem>>, vector<128x128xbf16>
      %cst_24 = arith.constant dense<0.000000e+00> : vector<8x128xf32>
      %37 = tpu.matmul %35, %36, %cst_24 {dimension_numbers = #tpu.dot_dimension_numbers<[1], [0], [0], [1], [0, 0, 1, 1], [], []>} : vector<8x128xbf16>, vector<128x128xbf16>, vector<8x128xf32> -> vector<8x128xf32>
      %c0_25 = arith.constant 0 : index
      %c0_26 = arith.constant 0 : index
      %38 = vector.load %arg10[%c0_25, %c0_26] : memref<1x128xf32, #tpu.memory_space<vmem>>, vector<1x128xf32>
      %39 = vector.broadcast %38 : vector<1x128xf32> to vector<8x128xf32>
      %40 = arith.addf %37, %39 : vector<8x128xf32>
      %41 = tpu.iota {dimensions = array<i32: 1>} : vector<8x128xi32>
      %c4_i32 = arith.constant 4 : i32
      %42 = vector.broadcast %c4_i32 : i32 to vector<8x128xi32>
      %43 = arith.cmpi slt, %41, %42 : vector<8x128xi32>
      %cst_27 = arith.constant -1.000000e+30 : f32
      %44 = vector.broadcast %cst_27 : f32 to vector<8x128xf32>
      %45 = arith.select %43, %40, %44 : vector<8x128xi1>, vector<8x128xf32>
      %cst_28 = arith.constant dense<0xFF800000> : vector<8xf32>
      %46 = vector.multi_reduction <maximumf>, %45, %cst_28 [1] : vector<8x128xf32> to vector<8xf32>
      %47 = vector.shape_cast %46 : vector<8xf32> to vector<8x1xf32>
      %48 = vector.broadcast %47 : vector<8x1xf32> to vector<8x128xf32>
      %49 = arith.subf %45, %48 : vector<8x128xf32>
      %50 = math.exp %49 : vector<8x128xf32>
      %cst_29 = arith.constant dense<0.000000e+00> : vector<8xf32>
      %51 = vector.multi_reduction <add>, %50, %cst_29 [1] : vector<8x128xf32> to vector<8xf32>
      %52 = vector.shape_cast %51 : vector<8xf32> to vector<8x1xf32>
      %53 = math.log %52 : vector<8x1xf32>
      %54 = vector.broadcast %53 : vector<8x1xf32> to vector<8x128xf32>
      %55 = arith.subf %49, %54 : vector<8x128xf32>
      %c0_30 = arith.constant 0 : index
      %c0_31 = arith.constant 0 : index
      %56 = vector.load %arg11[%c0_30, %c0_31] : memref<8x128xf32, #tpu.memory_space<vmem>>, vector<8x128xf32>
      tpu.vector_store %arg11[%c0_30, %c0_31], %55 {strides = array<i32>} : memref<8x128xf32, #tpu.memory_space<vmem>>, vector<8x128xf32>,
    } else {
    }
    return
  }
  func.func @transform_0(%arg0: i32, %arg1: i32) -> (i32, i32) {
    %c0_i32 = arith.constant 0 : i32
    %c0_i32_0 = arith.constant 0 : i32
    %c0_i32_1 = arith.constant 0 : i32
    return %c0_i32, %c0_i32_0 : i32, i32
  }
  func.func @transform_1(%arg0: i32, %arg1: i32) -> (i32, i32) {
    %c0_i32 = arith.constant 0 : i32
    %c0_i32_0 = arith.constant 0 : i32
    %c0_i32_1 = arith.constant 0 : i32
    return %c0_i32, %c0_i32_0 : i32, i32
  }
  func.func @transform_2(%arg0: i32, %arg1: i32) -> (i32, i32) {
    %c0_i32 = arith.constant 0 : i32
    %c0_i32_0 = arith.constant 0 : i32
    return %c0_i32, %arg1 : i32, i32
  }
  func.func @transform_3(%arg0: i32, %arg1: i32) -> (i32, i32) {
    %c0_i32 = arith.constant 0 : i32
    %c0_i32_0 = arith.constant 0 : i32
    %c0_i32_1 = arith.constant 0 : i32
    return %c0_i32, %c0_i32_0 : i32, i32
  }
  func.func @transform_4(%arg0: i32, %arg1: i32) -> (i32, i32) {
    %c0_i32 = arith.constant 0 : i32
    %c0_i32_0 = arith.constant 0 : i32
    %c0_i32_1 = arith.constant 0 : i32
    return %c0_i32, %c0_i32_0 : i32, i32
  }
  func.func @transform_5(%arg0: i32, %arg1: i32) -> (i32, i32) {
    %c0_i32 = arith.constant 0 : i32
    %c0_i32_0 = arith.constant 0 : i32
    %c0_i32_1 = arith.constant 0 : i32
    return %c0_i32, %c0_i32_0 : i32, i32
  }
  func.func @transform_6(%arg0: i32, %arg1: i32) -> (i32, i32) {
    %c0_i32 = arith.constant 0 : i32
    %c0_i32_0 = arith.constant 0 : i32
    %c0_i32_1 = arith.constant 0 : i32
    return %c0_i32, %c0_i32_0 : i32, i32
  }
  func.func @transform_7(%arg0: i32, %arg1: i32) -> (i32, i32) {
    %c0_i32 = arith.constant 0 : i32
    %c0_i32_0 = arith.constant 0 : i32
    %c0_i32_1 = arith.constant 0 : i32
    return %c0_i32, %c0_i32_0 : i32, i32
  }
  func.func @transform_8(%arg0: i32, %arg1: i32) -> (i32, i32) {
    %c0_i32 = arith.constant 0 : i32
    %c0_i32_0 = arith.constant 0 : i32
    %c0_i32_1 = arith.constant 0 : i32
    return %c0_i32, %c0_i32_0 : i32, i32
  }
  func.func @transform_9(%arg0: i32, %arg1: i32) -> (i32, i32) {
    %c0_i32 = arith.constant 0 : i32
    %c0_i32_0 = arith.constant 0 : i32
    %c0_i32_1 = arith.constant 0 : i32
    return %c0_i32, %c0_i32_0 : i32, i32
  }
}

</mosaic_0001>

<bundles_post_ra>
// kernel: tpu_custom_call.1
= control target key start
LH: loop header
LB: loop body
LE: loop exit
PB: predicated region body
PF: predicated region fallthrough
CT: control target
= control target key end

     0   :  { %s3083_s0 = inlined_call_operand.hbm [shape: bf16[128,128], index: 0, kind: input, shape index: {}]   ;;  %s3084_s1 = inlined_call_operand.hbm [shape: bf16[128,128], index: 1, kind: input, shape index: {}]   ;;  %s3085_s2 = inlined_call_operand.hbm [shape: bf16[8,128], index: 2, kind: input, shape index: {}]   ;;  %s3086_s3 = inlined_call_operand.hbm [shape: bf16[128,128], index: 3, kind: input, shape index: {}]   ;;  %s3087_s4 = inlined_call_operand.hbm [shape: f32[8,128], index: 4, kind: input, shape index: {}]   ;;  %s3088_s5 = inlined_call_operand.hbm [shape: bf16[128,128], index: 5, kind: input, shape index: {}]   ;;  %s3089_s6 = inlined_call_operand.hbm [shape: f32[1,128], index: 6, kind: input, shape index: {}]   ;;  %s3090_s7 = inlined_call_operand.hbm [shape: bf16[128,128], index: 7, kind: input, shape index: {}]   ;;  %s3091_s8 = inlined_call_operand.hbm [shape: f32[1,128], index: 8, kind: input, shape index: {}]   ;;  %s3092_s9 = inlined_call_operand.hbm [shape: f32[8,128], index: 9, kind: output, shape index: {}]  }
   0x1   :  { %3098 = sst [smem:[#allocation26_spill]] %s3084_s1 }
   0x2   :  { %3099 = sst [smem:[#allocation27_spill]] %s3092_s9 }
   0x3   :  { %14 = vsyncpa [#allocation5], 0 }
   0x4   :  { %15 = vsyncpa [#allocation8], 0 }
   0x5   :  { %16 = vsyncpa [#allocation11], 0 }
   0x6   :  { %17 = vsyncpa [#allocation14], 0 }
   0x7   :  { %18 = vsyncpa [#allocation17], 0 }
   0x8   :  { %19 = vsyncpa [#allocation6], 0  ;;  %s2575_s30 = smov 0   ;;  %s2577_s10 = smov 0  }
   0x9   :  { %s2579_s11 = smov 0  }
   0xa LB: > { %s3093_s12 = sadd.s32 4294967295, %s2504_s11   ;;  %p1633_p0 = scmp.ge.s32.totalorder %s2504_s11, 1  ;;  %s2504_s11 = sphi %s2579_s11, %s25_s11   ;;  %s2500_s10 = sphi %s2577_s10, %s3113_s10   ;;  %s2496_s30 = sphi %s2575_s30, %s3112_s30  }
   0xb   : > { %p257_p1 = scmp.lt.s32.totalorder %s2504_s11, 4  ;;  %p2595_p2 = scmp.eq.s32.totalorder %s3093_s12, 0 }
   0xc   : > { %s2506_s15 = smov [#allocation7]   ;;  %s2507_s17 = smov [#allocation10]  }
   0xd   : > { %s3100_s13 = scalar_select %p2595_p2, 1, 0 }
   0xe   : > { %p2599_p3 = pnand %p1633_p0, %p257_p1  ;;  %s282_s16 = sshll.u32 %s2506_s15, 4  ;;  %s2603_s16 = int_to_ptr.vmem [resolvable:$true] %s282_s16 }
   0xf   : > { %s308_s18 = sshll.u32 %s2507_s17, 4  ;;  %s2508_s20 = smov [#allocation13]   ;;  %s2607_s18 = int_to_ptr.vmem [resolvable:$true] %s308_s18 }
  0x10   : > { %s3101_s14 = scalar_select %p2599_p3, 1, 0 }
  0x11   : > { %p2053_p4 = pneg %p2599_p3  ;;  %s332_s21 = sshll.u32 %s2508_s20, 4  ;;  %s2615_s21 = int_to_ptr.vmem [resolvable:$true] %s332_s21 }
  0x12   : > { %s2509_s22 = smov [#allocation16]   ;;  %s3103_s1 = sld [smem:[#allocation26_spill]] }
  0x13   : > { %p2611_p5 = pnand %p2595_p2, %p2053_p4  ;;  %s2617_s23 = sshll.u32 %s2509_s22, 4  ;;  %s357_s23 = int_to_ptr.vmem [resolvable:$true] %s2617_s23 }
  0x15   : > { %p2627_p7 = pneg %p2611_p5 }
  0x18   : > { %s2180_s26 = scalar_lea.hbm %s3103_s1, 1024 }
  0x19   : > { %p2181_p6 = scmp.ne.s32.totalorder %s3103_s1, %s2180_s26  ;;  %p2187_p10 = scmp.lt.u32.totalorder %s2180_s26, %s3103_s1 }
  0x1b   : > { %p2183_p8 = pnand %p2627_p7, %p2181_p6 }
  0x1d   : > { %p2184_p9 = pneg %p2183_p8 }
  0x1f   : > { %p2189_p11 = pnand %p2187_p10, %p2184_p9 }
  0x21   : > { %2192 = shalt.err (!%p2189_p11)
}
  0x22   : > { %s2193_s20 = scalar_lea.vmem %s2603_s16, 1024  ;;  %p2201_p1 = scmp.lt.s32.totalorder %s2603_s16, %s2603_s16 }
  0x23   : > { %p2194_p12 = scmp.ne.s32.totalorder %s2603_s16, %s2193_s20  ;;  %p2202_p4 = scmp.lt.s32.totalorder %s2193_s20, %s2193_s20 }
  0x25   : > { %p2196_p13 = pnand %p2194_p12, %p2627_p7  ;;  %p2203_p6 = por %p2202_p4, %p2201_p1 }
  0x27   : > { %p2197_p0 = pneg %p2196_p13 }
  0x29   : > { %p2204_p8 = pnand %p2203_p6, %p2197_p0 }
  0x2b   : > { %2207 = shalt.err (!%p2204_p8)
}
  0x2c   : > { %s2510_s22 = smov 64   ;;  %s2511_s24 = smov 4  }
  0x2d   : > { %2059 = dma.hbm_to_vmem [thread:$0]  (!%p2611_p5), %s3103_s1, 1024, %s2603_s16, [#allocation8], %s2510_s22, %s2510_s22, %s2511_s24  }
  0x2e   : > { %s2208_s15 = scalar_lea.hbm %s3086_s3, 1024 }
  0x2f   : > { %p2209_p9 = scmp.ne.s32.totalorder %s3086_s3, %s2208_s15  ;;  %p2215_p12 = scmp.lt.u32.totalorder %s2208_s15, %s3086_s3 }
  0x31   : > { %p2211_p10 = pnand %p2209_p9, %p2627_p7 }
  0x33   : > { %p2212_p11 = pneg %p2211_p10 }
  0x35   : > { %p2217_p13 = pnand %p2215_p12, %p2212_p11 }
  0x37   : > { %2220 = shalt.err (!%p2217_p13)
}
  0x38   : > { %s2221_s16 = scalar_lea.vmem %s2607_s18, 1024  ;;  %p2229_p6 = scmp.lt.s32.totalorder %s2607_s18, %s2607_s18 }
  0x39   : > { %p2222_p0 = scmp.ne.s32.totalorder %s2607_s18, %s2221_s16  ;;  %p2230_p8 = scmp.lt.s32.totalorder %s2221_s16, %s2221_s16 }
  0x3b   : > { %p2224_p1 = pnand %p2222_p0, %p2627_p7  ;;  %p2231_p9 = por %p2230_p8, %p2229_p6 }
  0x3d   : > { %p2225_p4 = pneg %p2224_p1 }
  0x3f   : > { %p2232_p10 = pnand %p2231_p9, %p2225_p4 }
  0x41   : > { %2235 = shalt.err (!%p2232_p10)
}
  0x42   : > { %2065 = dma.hbm_to_vmem [thread:$0]  (!%p2611_p5), %s3086_s3, 1024, %s2607_s18, [#allocation11], %s2510_s22, %s2510_s22, %s2511_s24  }
  0x43   : > { %s2236_s27 = scalar_lea.hbm %s3088_s5, 1024 }
  0x44   : > { %p2237_p11 = scmp.ne.s32.totalorder %s3088_s5, %s2236_s27  ;;  %p2243_p0 = scmp.lt.u32.totalorder %s2236_s27, %s3088_s5 }
  0x46   : > { %p2239_p12 = pnand %p2237_p11, %p2627_p7 }
  0x48   : > { %p2240_p13 = pneg %p2239_p12 }
  0x4a   : > { %p2245_p1 = pnand %p2243_p0, %p2240_p13 }
  0x4c   : > { %2248 = shalt.err (!%p2245_p1)
}
  0x4d   : > { %s2249_s18 = scalar_lea.vmem %s2615_s21, 1024  ;;  %p2257_p9 = scmp.lt.s32.totalorder %s2615_s21, %s2615_s21 }
  0x4e   : > { %p2250_p4 = scmp.ne.s32.totalorder %s2615_s21, %s2249_s18  ;;  %p2258_p10 = scmp.lt.s32.totalorder %s2249_s18, %s2249_s18 }
  0x50   : > { %p2252_p6 = pnand %p2250_p4, %p2627_p7  ;;  %p2259_p11 = por %p2258_p10, %p2257_p9 }
  0x52   : > { %p2253_p8 = pneg %p2252_p6 }
  0x54   : > { %p2260_p12 = pnand %p2259_p11, %p2253_p8 }
  0x56   : > { %2263 = shalt.err (!%p2260_p12)
}
  0x57   : > { %2071 = dma.hbm_to_vmem [thread:$0]  (!%p2611_p5), %s3088_s5, 1024, %s2615_s21, [#allocation14], %s2510_s22, %s2510_s22, %s2511_s24  }
  0x58   : > { %s2264_s26 = scalar_lea.hbm %s3090_s7, 1024 }
  0x59   : > { %p2265_p13 = scmp.ne.s32.totalorder %s3090_s7, %s2264_s26  ;;  %p2271_p4 = scmp.lt.u32.totalorder %s2264_s26, %s3090_s7 }
  0x5b   : > { %p2267_p0 = pnand %p2265_p13, %p2627_p7 }
  0x5d   : > { %p2268_p1 = pneg %p2267_p0 }
  0x5f   : > { %p2273_p6 = pnand %p2271_p4, %p2268_p1 }
  0x61   : > { %2276 = shalt.err (!%p2273_p6)
}
  0x62   : > { %s2277_s20 = scalar_lea.vmem %s357_s23, 1024  ;;  %p2285_p11 = scmp.lt.s32.totalorder %s357_s23, %s357_s23 }
  0x63   : > { %p2278_p8 = scmp.ne.s32.totalorder %s357_s23, %s2277_s20  ;;  %p2286_p12 = scmp.lt.s32.totalorder %s2277_s20, %s2277_s20 }
  0x65   : > { %p2280_p9 = pnand %p2278_p8, %p2627_p7  ;;  %p2287_p2 = por %p2286_p12, %p2285_p11 }
  0x67   : > { %p2281_p10 = pneg %p2280_p9 }
  0x69   : > { %p2288_p3 = pnand %p2287_p2, %p2281_p10 }
  0x6b   : > { %2291 = shalt.err (!%p2288_p3)
}
  0x6c   : > { %2077 = dma.hbm_to_vmem [thread:$0]  (!%p2611_p5), %s3090_s7, 1024, %s357_s23, [#allocation17], %s2510_s22, %s2510_s22, %s2511_s24  }
  0x6d   : > { %s37_s16 = sadd.s32 1, %s2500_s10  ;;  %s2512_s9 = smov [#allocation4]  }
  0x6e   : > { %s269_s12 = sshll.u32 %s2512_s9, 4  ;;  %p2726_p13 = scmp.ge.s32.totalorder %s37_s16, 3  ;;  %s270_s12 = int_to_ptr.vmem [resolvable:$true] %s269_s12 }
  0x6f   : > { %s2292_s28 = scalar_lea.hbm %s3083_s0, 1024 }
  0x70   : > { %s3105_s25 = scalar_select %p2726_p13, 1, 0 }
  0x71   : > { %p2293_p2 = scmp.ne.s32.totalorder %s3083_s0, %s2292_s28  ;;  %p2299_p1 = scmp.lt.u32.totalorder %s2292_s28, %s3083_s0 }
  0x73   : > { %p2295_p3 = pnand %p2293_p2, %p2627_p7 }
  0x75   : > { %p2296_p0 = pneg %p2295_p3 }
  0x77   : > { %p2301_p4 = pnand %p2299_p1, %p2296_p0 }
  0x79   : > { %2304 = shalt.err (!%p2301_p4)
}
  0x7a   : > { %s2305_s21 = scalar_lea.vmem %s270_s12, 1024  ;;  %p2313_p10 = scmp.lt.s32.totalorder %s270_s12, %s270_s12 }
  0x7b   : > { %p2306_p6 = scmp.ne.s32.totalorder %s270_s12, %s2305_s21  ;;  %p2314_p11 = scmp.lt.s32.totalorder %s2305_s21, %s2305_s21 }
  0x7d   : > { %p2308_p8 = pnand %p2306_p6, %p2627_p7  ;;  %p2315_p12 = por %p2314_p11, %p2313_p10 }
  0x7f   : > { %p2309_p9 = pneg %p2308_p8 }
  0x81   : > { %p2316_p13 = pnand %p2315_p12, %p2309_p9 }
  0x83   : > { %2319 = shalt.err (!%p2316_p13)
}
  0x84   : > { %2056 = dma.hbm_to_vmem [thread:$0]  (!%p2611_p5), %s3083_s0, 1024, %s270_s12, [#allocation5], %s2510_s22, %s2510_s22, %s2511_s24  }
  0x85   : > { %p3106_p2 = scmp.ne.s32.totalorder %s3105_s25, 0  ;;  %s2513_s26 = smov [#allocation9]  }
  0x86   : > { %s298_s27 = sshll.u32 %s2513_s26, 4  ;;  %s2514_s28 = smov [#allocation12]   ;;  %s299_s27 = int_to_ptr.vmem [resolvable:$true] %s298_s27 }
  0x87   : > { %s3115_s16 = smov (%p3106_p2, %s37_s16), 0  ;;  %s322_s15 = sshll.u32 %s2514_s28, 4  ;;  %s2755_s15 = int_to_ptr.vmem [resolvable:$true] %s322_s15 }
  0x88   : > { %s2320_s20 = scalar_lea.hbm %s3085_s2, 64 }
  0x89   : > { %p2321_p13 = scmp.ne.s32.totalorder %s3085_s2, %s2320_s20  ;;  %p2327_p1 = scmp.lt.u32.totalorder %s2320_s20, %s3085_s2 }
  0x8b   : > { %p2323_p3 = pnand %p2321_p13, %p2627_p7 }
  0x8d   : > { %p2324_p0 = pneg %p2323_p3 }
  0x8f   : > { %p2329_p4 = pnand %p2327_p1, %p2324_p0 }
  0x91   : > { %2332 = shalt.err (!%p2329_p4)
}
  0x92   : > { %s2333_s12 = scalar_lea.vmem %s299_s27, 64  ;;  %p2341_p10 = scmp.lt.s32.totalorder %s299_s27, %s299_s27 }
  0x93   : > { %p2334_p6 = scmp.ne.s32.totalorder %s299_s27, %s2333_s12  ;;  %p2342_p11 = scmp.lt.s32.totalorder %s2333_s12, %s2333_s12 }
  0x95   : > { %p2336_p8 = pnand %p2334_p6, %p2627_p7  ;;  %p2343_p12 = por %p2342_p11, %p2341_p10 }
  0x97   : > { %p2337_p9 = pneg %p2336_p8 }
  0x99   : > { %p2344_p2 = pnand %p2343_p12, %p2337_p9 }
  0x9b   : > { %2347 = shalt.err (!%p2344_p2)
}
  0x9c   : > { %2062 = dma.hbm_to_vmem [thread:$0]  (!%p2611_p5), %s3085_s2, 64, %s299_s27, [#allocation8]  }
  0x9d   : > { %s2348_s26 = scalar_lea.hbm %s3087_s4, 128 }
  0x9e   : > { %p2349_p13 = scmp.ne.s32.totalorder %s3087_s4, %s2348_s26  ;;  %p2355_p1 = scmp.lt.u32.totalorder %s2348_s26, %s3087_s4 }
  0xa0   : > { %p2351_p3 = pnand %p2349_p13, %p2627_p7 }
  0xa2   : > { %p2352_p0 = pneg %p2351_p3 }
  0xa4   : > { %p2357_p4 = pnand %p2355_p1, %p2352_p0 }
  0xa6   : > { %2360 = shalt.err (!%p2357_p4)
}
  0xa7   : > { %s2361_s27 = scalar_lea.vmem %s2755_s15, 128  ;;  %p2369_p10 = scmp.lt.s32.totalorder %s2755_s15, %s2755_s15 }
  0xa8   : > { %p2362_p6 = scmp.ne.s32.totalorder %s2755_s15, %s2361_s27  ;;  %p2370_p11 = scmp.lt.s32.totalorder %s2361_s27, %s2361_s27 }
  0xaa   : > { %p2364_p8 = pnand %p2362_p6, %p2627_p7  ;;  %p2371_p12 = por %p2370_p11, %p2369_p10 }
  0xac   : > { %p2365_p9 = pneg %p2364_p8 }
  0xae   : > { %p2372_p2 = pnand %p2371_p12, %p2365_p9 }
  0xb0   : > { %2375 = shalt.err (!%p2372_p2)
}
  0xb1   : > { %2068 = dma.hbm_to_vmem [thread:$0]  (!%p2611_p5), %s3087_s4, 128, %s2755_s15, [#allocation11]  }
  0xb2   : > { %s2515_s24 = smov [#allocation15]   ;;  %s2516_s1 = smov [#allocation18]  }
  0xb3   : > { %s346_s12 = sshll.u32 %s2515_s24, 4  ;;  %s370_s25 = sshll.u32 %s2516_s1, 4  ;;  %s347_s12 = int_to_ptr.vmem [resolvable:$true] %s346_s12  ;;  %s2798_s25 = int_to_ptr.vmem [resolvable:$true] %s370_s25 }
  0xb4   : > { %s2376_s26 = scalar_lea.hbm %s3089_s6, 16 }
  0xb5   : > { %p2377_p13 = scmp.ne.s32.totalorder %s3089_s6, %s2376_s26  ;;  %p2383_p1 = scmp.lt.u32.totalorder %s2376_s26, %s3089_s6 }
  0xb7   : > { %p2379_p3 = pnand %p2377_p13, %p2627_p7 }
  0xb9   : > { %p2380_p0 = pneg %p2379_p3 }
  0xbb   : > { %p2385_p4 = pnand %p2383_p1, %p2380_p0 }
  0xbd   : > { %2388 = shalt.err (!%p2385_p4)
}
  0xbe   : > { %s2389_s20 = scalar_lea.vmem %s347_s12, 16  ;;  %s2396_s27 = scalar_lea.vmem %s347_s12, 32 }
  0xbf   : > { %p2390_p6 = scmp.ne.s32.totalorder %s347_s12, %s2389_s20  ;;  %p2397_p10 = scmp.lt.s32.totalorder %s347_s12, %s347_s12 }
  0xc0   : > { %p2398_p11 = scmp.lt.s32.totalorder %s2396_s27, %s2389_s20 }
  0xc1   : > { %p2392_p8 = pnand %p2390_p6, %p2627_p7 }
  0xc2   : > { %p2399_p12 = por %p2398_p11, %p2397_p10 }
  0xc3   : > { %p2393_p9 = pneg %p2392_p8 }
  0xc5   : > { %p2400_p2 = pnand %p2399_p12, %p2393_p9 }
  0xc7   : > { %2403 = shalt.err (!%p2400_p2)
}
  0xc8   : > { %2074 = dma.hbm_to_vmem [thread:$0]  (!%p2611_p5), %s3089_s6, 16, %s347_s12, [#allocation14]  }
  0xc9   : > { %s2404_s18 = scalar_lea.hbm %s3091_s8, 16 }
  0xca   : > { %p2405_p13 = scmp.ne.s32.totalorder %s3091_s8, %s2404_s18  ;;  %p2411_p1 = scmp.lt.u32.totalorder %s2404_s18, %s3091_s8 }
  0xcc   : > { %p2407_p3 = pnand %p2405_p13, %p2627_p7 }
  0xce   : > { %p2408_p0 = pneg %p2407_p3 }
  0xd0   : > { %p2413_p4 = pnand %p2411_p1, %p2408_p0 }
  0xd2   : > { %2416 = shalt.err (!%p2413_p4)
}
  0xd3   : > { %s2417_s12 = scalar_lea.vmem %s2798_s25, 16  ;;  %s2424_s23 = scalar_lea.vmem %s2798_s25, 32 }
  0xd4   : > { %p2418_p6 = scmp.ne.s32.totalorder %s2798_s25, %s2417_s12  ;;  %p2425_p10 = scmp.lt.s32.totalorder %s2798_s25, %s2798_s25 }
  0xd5   : > { %p2426_p11 = scmp.lt.s32.totalorder %s2424_s23, %s2417_s12 }
  0xd6   : > { %p2420_p8 = pnand %p2418_p6, %p2627_p7 }
  0xd7   : > { %p2427_p12 = por %p2426_p11, %p2425_p10 }
  0xd8   : > { %p2421_p9 = pneg %p2420_p8 }
  0xda   : > { %p2428_p2 = pnand %p2427_p12, %p2421_p9 }
  0xdc   : > { %2431 = shalt.err (!%p2428_p2)
}
  0xdd   : > { %2080 = dma.hbm_to_vmem [thread:$0]  (!%p2611_p5), %s3091_s8, 16, %s2798_s25, [#allocation17]  }
  0xde   : > { %p3107_p13 = scmp.ne.s32.totalorder %s3101_s14, 0 }
  0xdf   : > { %p3108_p7 = scmp.ne.s32.totalorder (!%p3107_p13), %s3100_s13, 0 }
  0xe0   : > { %383 = sbr.rel (%p3107_p13) target bundleno = 2368 (0x940), region = 56 }
  0xe7   : > { %2471 = dma.done.wait (%p3108_p7), [#allocation5], 1024  }
  0xe8   : > { %2473 = vsyncadd (%p3108_p7), [#allocation5], 4294966272 }
  0xe9   : > { %2475 = dma.done.wait (%p3108_p7), [#allocation8], 1088  }
  0xea   : > { %2477 = vsyncadd (%p3108_p7), [#allocation8], 4294966208 }
  0xeb   : > { %2479 = dma.done.wait (%p3108_p7), [#allocation11], 1152  }
  0xec   : > { %2481 = vsyncadd (%p3108_p7), [#allocation11], 4294966144 }
  0xed   : > { %2483 = dma.done.wait (%p3108_p7), [#allocation14], 1040  }
  0xee   : > { %2485 = vsyncadd (%p3108_p7), [#allocation14], 4294966256 }
  0xef   : > { %2487 = dma.done.wait (%p3108_p7), [#allocation17], 1040  }
  0xf0   : > { %2489 = vsyncadd (%p3108_p7), [#allocation17], 4294966256  ;;  %p443_p5 = scmp.eq.s32.totalorder %s2496_s30, 0 }
  0xf1   : > { %v2517_v0 = vmov (%p443_p5), 0.0  }
  0xf2   : > { %448 = sbr.rel (!%p443_p5) target bundleno = 249 (0xf9), region = 96  ;;  %449 = vst [vmem:[#allocation3] sm:$0xff] (%p443_p5), %v2517_v0 }
  0xf9 PF: > { %v2865_v1 = vld [vmem:[#allocation4] sm:$0xf]  ;;  %v2867_v2 = vld [vmem:[#allocation4 + $0x4] sm:$0xf]  ;;  %v2869_v3 = vld [vmem:[#allocation4 + $0x8] sm:$0xf] }
  0xfa   : > { %v2871_v4 = vld [vmem:[#allocation4 + $0xc] sm:$0xf]  ;;  %v2873_v5 = vld [vmem:[#allocation4 + $0x10] sm:$0xf]  ;;  %v2875_v6 = vld [vmem:[#allocation4 + $0x14] sm:$0xf] }
  0xfb   : > { %v2877_v7 = vld [vmem:[#allocation4 + $0x18] sm:$0xf]  ;;  %v2879_v8 = vld [vmem:[#allocation4 + $0x1c] sm:$0xf]  ;;  %v2881_v9 = vld [vmem:[#allocation4 + $0x20] sm:$0xf] }
  0xfc   : > { %v2883_v10 = vld [vmem:[#allocation4 + $0x24] sm:$0xf]  ;;  %v2885_v11 = vld [vmem:[#allocation4 + $0x28] sm:$0xf]  ;;  %v2887_v12 = vld [vmem:[#allocation4 + $0x2c] sm:$0xf] }
  0xfd   : > { %v2889_v13 = vld [vmem:[#allocation4 + $0x30] sm:$0xf]  ;;  %v2891_v14 = vld [vmem:[#allocation4 + $0x34] sm:$0xf]  ;;  %v2893_v15 = vld [vmem:[#allocation4 + $0x38] sm:$0xf] }
  0xfe   : > { %v2895_v16 = vld [vmem:[#allocation4 + $0x3c] sm:$0xf]  ;;  %v2897_v17 = vld [vmem:[#allocation9] sm:$0xf]  ;;  %p1654_p3 = scmp.ne.s32.totalorder %s2496_s30, 0 }
  0xff   : > { %v2144_v18 = vld [vmem:[#allocation7] sm:$0xff] (!%p1654_p3)   ;;  %v1655_v19 = vcombine.low (!%p1654_p3), %v2865_v1, %v2867_v2  ;;  %v2145_v20 = vld [vmem:[#allocation7 + $0x8] sm:$0xff] (!%p1654_p3)   ;;  %v2146_v21 = vld [vmem:[#allocation7 + $0x10] sm:$0xff] (!%p1654_p3)   ;;  %v1656_v27 = vcombine.low (!%p1654_p3), %v2869_v3, %v2871_v4  ;;  %v1657_v28 = vcombine.low (!%p1654_p3), %v2873_v5, %v2875_v6  ;;  %v1658_v29 = vcombine.low (!%p1654_p3), %v2877_v7, %v2879_v8  ;;  %p1671_p0 = scmp.ge.s32.totalorder (!%p1654_p3), %s2496_s30, 2 }
 0x100   : > { %473 = sbr.rel (%p1654_p3) target bundleno = 792 (0x318), region = 100  ;;  %1849 = vmatprep.subr.bf16.mxu0 (!%p1654_p3), %v2144_v18  ;;  %v2147_v22 = vld [vmem:[#allocation7 + $0x18] sm:$0xff] (!%p1654_p3)   ;;  %v2148_v23 = vld [vmem:[#allocation7 + $0x20] sm:$0xff] (!%p1654_p3)   ;;  %v2149_v24 = vld [vmem:[#allocation7 + $0x28] sm:$0xff] (!%p1654_p3)   ;;  %v1659_v30 = vcombine.low (!%p1654_p3), %v2881_v9, %v2883_v10  ;;  %v1660_v31 = vcombine.low (!%p1654_p3), %v2885_v11, %v2887_v12  ;;  %v1661_v32 = vcombine.low (!%p1654_p3), %v2889_v13, %v2891_v14  ;;  %v1662_v33 = vcombine.low (!%p1654_p3), %v2893_v15, %v2895_v16 }
 0x101   : > { %1865 = vmatprep.mubr.bf16.mxu0 (!%p1654_p3), %v1655_v19  ;;  %1850 = vmatpush3.bf16.msra.mxu0 (!%p1654_p3), %v2144_v18  ;;  %v2150_v25 = vld [vmem:[#allocation7 + $0x30] sm:$0xff] (!%p1654_p3)   ;;  %v2151_v26 = vld [vmem:[#allocation7 + $0x38] sm:$0xff] (!%p1654_p3)  }
 0x102   : > { %1851 = vmatprep.subr.bf16.mxu0 (!%p1654_p3), %v2145_v20 }
 0x105   : > { %1852 = vmatpush3.bf16.msra.mxu0 (!%p1654_p3), %v2145_v20 }
 0x106   : > { %1853 = vmatprep.subr.bf16.mxu0 (!%p1654_p3), %v2146_v21 }
 0x107   : > { %s695_s13 = sadd.s32 (!%p1671_p0), 1, %s2496_s30 }
 0x108   : > { %p696_p1 = scmp.lt.s32.totalorder (!%p1671_p0), %s695_s13, 0  ;;  %s697_s14 = ssub.s32 (!%p1671_p0), 0, %s695_s13 }
 0x109   : > { %1854 = vmatpush3.bf16.msra.mxu0 %v2146_v21  ;;  %s1672_s19 = smin.u32 (!%p1671_p0), %s697_s14, %s695_s13 }
 0x10a   : > { %1855 = vmatprep.subr.bf16.mxu0 %v2147_v22  ;;  %s699_s29 = sand.u32 (!%p1671_p0), 1, %s1672_s19  }
 0x10b   : > { %s700_s25 = ssub.s32 (!%p1671_p0), 0, %s699_s29 }
 0x10d   : > { %1856 = vmatpush3.bf16.msra.mxu0 %v2147_v22 }
 0x10e   : > { %1857 = vmatprep.subr.bf16.mxu0 %v2148_v23 }
 0x111   : > { %1858 = vmatpush3.bf16.msra.mxu0 %v2148_v23 }
 0x112   : > { %1859 = vmatprep.subr.bf16.mxu0 %v2149_v24 }
 0x115   : > { %1860 = vmatpush3.bf16.msra.mxu0 %v2149_v24 }
 0x116   : > { %1861 = vmatprep.subr.bf16.mxu0 %v2150_v25 }
 0x119   : > { %1862 = vmatpush3.bf16.msra.mxu0 %v2150_v25 }
 0x11a   : > { %1863 = vmatprep.subr.bf16.mxu0 %v2151_v26 }
 0x11d   : > { %1864 = vmatpush3.bf16.msra.mxu0 %v2151_v26 }
 0x120   : > { %1866 = vmatmul.mubr.bf16.vlgmr.msra.gmra.mrb[0].mxu0 %v1656_v27 }
 0x121   : > { %1869 = vmatprep.mubr.bf16.mxu0 %v1657_v28 }
 0x128   : > { %1870 = vmatmul.mubr.bf16.gmra.mrb[4].mxu0 %v1658_v29 }
 0x129   : > { %1873 = vmatprep.mubr.bf16.mxu0 %v1659_v30 }
 0x130   : > { %1874 = vmatmul.mubr.bf16.gmra.mrb[8].mxu0 %v1660_v31 }
 0x131   : > { %1877 = vmatprep.mubr.bf16.mxu0 %v1661_v32 }
 0x138   : > { %1878 = vmatmul.mubr.bf16.gmra.mrb[12].mxu0 %v1662_v33 }
 0x1f3   : > { %v1867_v34 = vpop.f32.mrb[0].mxu0 }
 0x1f4   : > { %v620_v35 = vpop.f32.mrb[1].mxu0 }
 0x1f5   : > { %v1868_v36 = vpop.f32.mrb[2].mxu0 }
 0x1f6   : > { %v623_v37 = vpop.f32.mrb[3].mxu0  ;;  %v688_v51 = vpack.c.bf16 (!%p1671_p0), %v1868_v36, %v1867_v34 }
 0x1f7   : > { %v687_v50 = vpack.c.bf16 (!%p1671_p0), %v623_v37, %v620_v35 }
 0x1fb   : > { %v2916_v38 = vpop.f32.mrb[4].mxu0 }
 0x1fc   : > { %v636_v39 = vpop.f32.mrb[5].mxu0 }
 0x1fd   : > { %v2918_v40 = vpop.f32.mrb[6].mxu0 }
 0x1fe   : > { %v639_v41 = vpop.f32.mrb[7].mxu0  ;;  %v690_v53 = vpack.c.bf16 (!%p1671_p0), %v2918_v40, %v2916_v38 }
 0x1ff   : > { %v689_v52 = vpack.c.bf16 (!%p1671_p0), %v639_v41, %v636_v39 }
 0x203   : > { %v2920_v42 = vpop.f32.mrb[8].mxu0 }
 0x204   : > { %v2922_v43 = vpop.f32.mrb[9].mxu0 }
 0x205   : > { %v2924_v44 = vpop.f32.mrb[10].mxu0 }
 0x206   : > { %v2926_v45 = vpop.f32.mrb[11].mxu0  ;;  %v692_v55 = vpack.c.bf16 (!%p1671_p0), %v2924_v44, %v2920_v42 }
 0x207   : > { %v691_v54 = vpack.c.bf16 (!%p1671_p0), %v2926_v45, %v2922_v43 }
 0x208   : > { %686 = sbr.rel (%p1671_p0) target bundleno = 537 (0x219), region = 104 }
 0x20b   : > { %v2928_v46 = vpop.f32.mrb[12].mxu0 }
 0x20c   : > { %v2930_v47 = vpop.f32.mrb[13].mxu0 }
 0x20d   : > { %v2932_v48 = vpop.f32.mrb[14].mxu0 }
 0x20e   : > { %v2934_v49 = vpop.f32.mrb[15].mxu0  ;;  %v694_v57 = vpack.c.bf16 (!%p1671_p0), %v2932_v48, %v2928_v46 }
 0x20f   : > { %s3117_s25 = smov (!%p696_p1, %s700_s25), %s699_s29  ;;  %v693_v56 = vpack.c.bf16 %v2934_v49, %v2930_v47 }
 0x210   : > { %p1674_p4 = scmp.lt.s32.totalorder %s3117_s25, 0  ;;  %s706_s27 = sadd.s32 2, %s3117_s25 }
 0x212   : > { %s3119_s27 = smov (!%p1674_p4, %s706_s27), %s3117_s25 }
 0x213   : > { %s1729_s21 = sshll.u32 %s3119_s27, 6 }
 0x214   : > { %s713_s22 = scalar_lea.vmem [#allocation2], %s1729_s21 }
 0x215   : > { %714 = vst [vmem:[%s713_s22] sm:$0xff] %v687_v50  ;;  %715 = vst [vmem:[%s713_s22 + $0x8] sm:$0xff] %v688_v51 }
 0x216   : > { %716 = vst [vmem:[%s713_s22 + $0x10] sm:$0xff] %v689_v52  ;;  %717 = vst [vmem:[%s713_s22 + $0x18] sm:$0xff] %v690_v53 }
 0x217   : > { %718 = vst [vmem:[%s713_s22 + $0x20] sm:$0xff] %v691_v54  ;;  %719 = vst [vmem:[%s713_s22 + $0x28] sm:$0xff] %v692_v55 }
 0x218   : > { %720 = vst [vmem:[%s713_s22 + $0x30] sm:$0xff] %v693_v56  ;;  %721 = vst [vmem:[%s713_s22 + $0x38] sm:$0xff] %v694_v57 }
 0x219 PF: > { %v722_v58 = vmul.f32 0.3, %v620_v35  ;;  %v1734_v59 = vld [vmem:[#allocation7] sm:$0xff]   ;;  %v2518_v60 = vmov 0.0   ;;  %v723_v61 = vmul.f32 0.3, %v623_v37 }
 0x21a   : > { %1881 = vmatprep.subr.bf16.mxu1 %v2518_v60  ;;  %v1735_v62 = vunpack.c.l.bf16 %v1734_v59  ;;  %v1736_v63 = vunpack.c.h.bf16 %v1734_v59  ;;  %v724_v0 = vmul.f32 0.3, %v1867_v34  ;;  %v1765_v18 = vld [vmem:[#allocation7 + $0x8] sm:$0xff]   ;;  %v1766_v19 = vld [vmem:[#allocation7 + $0x10] sm:$0xff]   ;;  %v725_v20 = vmul.f32 0.3, %v1868_v36 }
 0x21b   : > { %v1739_v21 = vunpack.c.l.bf16 %v1765_v18  ;;  %v1740_v22 = vunpack.c.h.bf16 %v1765_v18  ;;  %v726_v23 = vmul.f32 0.3, %v636_v39  ;;  %v1767_v24 = vld [vmem:[#allocation7 + $0x18] sm:$0xff]   ;;  %v1743_v27 = vunpack.c.l.bf16 %v1766_v19  ;;  %v1768_v36 = vld [vmem:[#allocation7 + $0x20] sm:$0xff]   ;;  %v1769_v59 = vld [vmem:[#allocation7 + $0x28] sm:$0xff]  }
 0x21c   : > { %v772_v25 = vmul.f32 0.1, %v1735_v62  ;;  %v773_v26 = vmul.f32 0.1, %v1736_v63  ;;  %v1744_v28 = vunpack.c.h.bf16 %v1766_v19  ;;  %v727_v31 = vmul.f32 0.3, %v639_v41 }
 0x21d   : > { %v774_v29 = vmul.f32 0.1, %v1739_v21  ;;  %v775_v30 = vmul.f32 0.1, %v1740_v22  ;;  %v1747_v32 = vunpack.c.l.bf16 %v1767_v24  ;;  %v776_v37 = vmul.f32 0.1, %v1743_v27 }
 0x21e   : > { %v788_v33 = vadd.f32 %v772_v25, %v722_v58  ;;  %v789_v35 = vadd.f32 %v773_v26, %v723_v61  ;;  %v777_v50 = vmul.f32 0.1, %v1744_v28  ;;  %v1748_v52 = vunpack.c.h.bf16 %v1767_v24 }
 0x21f   : > { %v790_v34 = vadd.f32 %v774_v29, %v724_v0  ;;  %v791_v51 = vadd.f32 %v775_v30, %v725_v20  ;;  %v728_v39 = vmul.f32 0.3, %v2916_v38  ;;  %v792_v54 = vadd.f32 %v776_v37, %v726_v23  ;;  %v1770_v23 = vld [vmem:[#allocation7 + $0x30] sm:$0xff]  }
 0x220   : > { %v805_v53 = vpack.c.bf16 %v789_v35, %v788_v33  ;;  %v793_v55 = vadd.f32 %v777_v50, %v727_v31  ;;  %v729_v56 = vmul.f32 0.3, %v2918_v40  ;;  %v778_v57 = vmul.f32 0.1, %v1747_v32  ;;  %v1771_v31 = vld [vmem:[#allocation7 + $0x38] sm:$0xff]  }
 0x221   : > { %v806_v41 = vpack.c.bf16 %v791_v51, %v790_v34  ;;  %v779_v62 = vmul.f32 0.1, %v1748_v52  ;;  %v1751_v58 = vunpack.c.l.bf16 %v1768_v36  ;;  %v1752_v61 = vunpack.c.h.bf16 %v1768_v36 }
 0x222   : > { %1882 = vmatpush3.bf16.msra.mxu1 %v805_v53  ;;  %v730_v63 = vmul.f32 0.3, %v2922_v43  ;;  %v1755_v0 = vunpack.c.l.bf16 %v1769_v59  ;;  %v731_v18 = vmul.f32 0.3, %v2926_v45  ;;  %v807_v20 = vpack.c.bf16 %v793_v55, %v792_v54 }
 0x223   : > { %1883 = vmatprep.subr.bf16.mxu1 %v2518_v60  ;;  %v780_v19 = vmul.f32 0.1, %v1751_v58  ;;  %v781_v38 = vmul.f32 0.1, %v1752_v61  ;;  %v794_v21 = vadd.f32 %v778_v57, %v728_v39  ;;  %v795_v40 = vadd.f32 %v779_v62, %v729_v56 }
 0x224   : > { %v1756_v22 = vunpack.c.h.bf16 %v1769_v59  ;;  %v732_v24 = vmul.f32 0.3, %v2920_v42  ;;  %v782_v25 = vmul.f32 0.1, %v1755_v0  ;;  %v1759_v28 = vunpack.c.l.bf16 %v1770_v23 }
 0x225   : > { %v796_v26 = vadd.f32 %v780_v19, %v730_v63  ;;  %v797_v27 = vadd.f32 %v781_v38, %v731_v18  ;;  %v808_v43 = vpack.c.bf16 %v795_v40, %v794_v21  ;;  %v733_v45 = vmul.f32 0.3, %v2924_v44 }
 0x226   : > { %1884 = vmatpush3.bf16.msra.mxu1 %v806_v41  ;;  %v783_v29 = vmul.f32 0.1, %v1756_v22  ;;  %v1760_v30 = vunpack.c.h.bf16 %v1770_v23  ;;  %vm2519_vm0 = vmmov 0   ;;  %v734_v32 = vmul.f32 0.3, %v2930_v47 }
 0x227   : > { %1885 = vmatprep.subr.bf16.mxu1 %v2518_v60  ;;  %1897 = vmatprep.mubr.msk.bf16.mxu1 %vm2519_vm0, %v2518_v60  ;;  %v809_v33 = vpack.c.bf16 %v797_v27, %v796_v26  ;;  %v798_v42 = vadd.f32 %v782_v25, %v732_v24  ;;  %v735_v35 = vmul.f32 0.3, %v2934_v49  ;;  %v784_v37 = vmul.f32 0.1, %v1759_v28 }
 0x228   : > { %v799_v50 = vadd.f32 %v783_v29, %v733_v45  ;;  %v785_v34 = vmul.f32 0.1, %v1760_v30  ;;  %v1763_v51 = vunpack.c.l.bf16 %v1771_v31  ;;  %v1764_v44 = vunpack.c.h.bf16 %v1771_v31 }
 0x229   : > { %v800_v52 = vadd.f32 %v784_v37, %v734_v32  ;;  %v736_v36 = vmul.f32 0.3, %v2928_v46  ;;  %v737_v53 = vmul.f32 0.3, %v2932_v48  ;;  %v804_v46 = vld [vmem:[#allocation3] sm:$0xff] }
 0x22a   : > { %1886 = vmatpush3.bf16.msra.mxu1 %v807_v20  ;;  %v810_v39 = vpack.c.bf16 %v799_v50, %v798_v42  ;;  %v801_v47 = vadd.f32 %v785_v34, %v735_v35  ;;  %v786_v54 = vmul.f32 0.1, %v1763_v51  ;;  %v787_v55 = vmul.f32 0.1, %v1764_v44 }
 0x22b   : > { %1887 = vmatprep.subr.bf16.mxu1 %v2518_v60 }
 0x22c   : > { %v811_v49 = vpack.c.bf16 %v801_v47, %v800_v52  ;;  %v802_v56 = vadd.f32 %v786_v54, %v736_v36  ;;  %v803_v57 = vadd.f32 %v787_v55, %v737_v53 }
 0x22e   : > { %1888 = vmatpush3.bf16.msra.mxu1 %v808_v43  ;;  %v812_v59 = vpack.c.bf16 %v803_v57, %v802_v56 }
 0x22f   : > { %1889 = vmatprep.subr.bf16.mxu1 %v2518_v60 }
 0x232   : > { %1890 = vmatpush3.bf16.msra.mxu1 %v809_v33 }
 0x233   : > { %1891 = vmatprep.subr.bf16.mxu1 %v2518_v60 }
 0x236   : > { %1892 = vmatpush3.bf16.msra.mxu1 %v810_v39 }
 0x237   : > { %1893 = vmatprep.subr.bf16.mxu1 %v2518_v60 }
 0x23a   : > { %1894 = vmatpush3.bf16.msra.mxu1 %v811_v49 }
 0x23b   : > { %1895 = vmatprep.subr.bf16.mxu1 %v2518_v60 }
 0x23e   : > { %1896 = vmatpush3.bf16.msra.mxu1 %v812_v59 }
 0x241   : > { %1898 = vmatmul.mubr.bf16.vlgmr.msra.gmra.mrb[0].mxu1 %v2897_v17 }
 0x314   : > { %v847_v48 = vpop.f32.mrb[0].mxu1 }
 0x315   : > { %v853_v41 = vadd.f32 %v847_v48, %v804_v46  ;;  %v1899_v62 = vpop.f32.mrb[1].mxu1 }
 0x316   : > { %v850_v58 = vpop.f32.mrb[2].mxu1 }
 0x317   : > { %854 = vst [vmem:[#allocation3] sm:$0xff] %v853_v41  ;;  %v1900_v61 = vpop.f32.mrb[3].mxu1 }
 0x318 PF: > { %p1677_p6 = scmp.le.s32.totalorder %s2496_s30, 0 }
 0x319   : > { %p859_p8 = scmp.lt.s32.totalorder (!%p1677_p6), %s2496_s30, 0  ;;  %s860_s24 = ssub.s32 (!%p1677_p6), 0, %s2496_s30  ;;  %v1683_v60 = vcombine.low (!%p1677_p6), %v2865_v1, %v2867_v2  ;;  %v1684_v21 = vcombine.low (!%p1677_p6), %v2869_v3, %v2871_v4  ;;  %v1685_v40 = vcombine.low (!%p1677_p6), %v2873_v5, %v2875_v6  ;;  %v1686_v22 = vcombine.low (!%p1677_p6), %v2877_v7, %v2879_v8 }
 0x31a   : > { %858 = sbr.rel (%p1677_p6) target bundleno = 1339 (0x53b), region = 108  ;;  %s1678_s1 = smin.u32 (!%p1677_p6), %s2496_s30, %s860_s24  ;;  %v1687_v23 = vcombine.low (!%p1677_p6), %v2881_v9, %v2883_v10  ;;  %v1688_v24 = vcombine.low (!%p1677_p6), %v2885_v11, %v2887_v12  ;;  %v1689_v3 = vcombine.low (!%p1677_p6), %v2889_v13, %v2891_v14  ;;  %v1690_v4 = vcombine.low (!%p1677_p6), %v2893_v15, %v2895_v16 }
 0x31b   : > { %s862_s18 = sand.u32 (!%p1677_p6), 1, %s1678_s1   ;;  %1917 = vmatprep.mubr.bf16.mxu0 (!%p1677_p6), %v1683_v60  ;;  %p1691_p10 = scmp.ge.s32.totalorder (!%p1677_p6), %s2496_s30, 2 }
 0x31c   : > { %s863_s9 = ssub.s32 (!%p1677_p6), 0, %s862_s18 }
 0x321   : > { %s3121_s9 = smov (!%p859_p8, %s863_s9), %s862_s18  ;;  %s1039_s12 = sadd.s32 (!%p1691_p10), 1, %s2496_s30 }
 0x322   : > { %p1680_p9 = scmp.lt.s32.totalorder %s3121_s9, 0  ;;  %s869_s26 = sadd.s32 2, %s3121_s9 }
 0x323   : > { %p1040_p11 = scmp.lt.s32.totalorder (!%p1691_p10), %s1039_s12, 0  ;;  %s1041_s23 = ssub.s32 (!%p1691_p10), 0, %s1039_s12 }
 0x324   : > { %s3123_s26 = smov (!%p1680_p9, %s869_s26), %s3121_s9  ;;  %s1692_s15 = smin.u32 (!%p1691_p10), %s1041_s23, %s1039_s12 }
 0x325   : > { %s1730_s28 = sshll.u32 %s3123_s26, 6  ;;  %s1043_s20 = sand.u32 (!%p1691_p10), 1, %s1692_s15  }
 0x326   : > { %s873_s17 = scalar_lea.vmem [#allocation2], %s1730_s28  ;;  %s1044_s13 = ssub.s32 (!%p1691_p10), 0, %s1043_s20 }
 0x327   : > { %v874_v63 = vld [vmem:[%s873_s17] sm:$0xff]  ;;  %v875_v0 = vld [vmem:[%s873_s17 + $0x8] sm:$0xff]  ;;  %v876_v18 = vld [vmem:[%s873_s17 + $0x10] sm:$0xff] }
 0x328   : > { %1901 = vmatprep.subr.bf16.mxu0 %v874_v63  ;;  %v877_v19 = vld [vmem:[%s873_s17 + $0x18] sm:$0xff]  ;;  %v878_v1 = vld [vmem:[%s873_s17 + $0x20] sm:$0xff]  ;;  %v879_v2 = vld [vmem:[%s873_s17 + $0x28] sm:$0xff] }
 0x329   : > { %1902 = vmatpush3.bf16.msra.mxu0 %v874_v63  ;;  %v880_v38 = vld [vmem:[%s873_s17 + $0x30] sm:$0xff]  ;;  %v881_v20 = vld [vmem:[%s873_s17 + $0x38] sm:$0xff] }
 0x32a   : > { %1903 = vmatprep.subr.bf16.mxu0 %v875_v0 }
 0x32d   : > { %1904 = vmatpush3.bf16.msra.mxu0 %v875_v0 }
 0x32e   : > { %1905 = vmatprep.subr.bf16.mxu0 %v876_v18 }
 0x331   : > { %1906 = vmatpush3.bf16.msra.mxu0 %v876_v18 }
 0x332   : > { %1907 = vmatprep.subr.bf16.mxu0 %v877_v19 }
 0x335   : > { %1908 = vmatpush3.bf16.msra.mxu0 %v877_v19 }
 0x336   : > { %1909 = vmatprep.subr.bf16.mxu0 %v878_v1 }
 0x339   : > { %1910 = vmatpush3.bf16.msra.mxu0 %v878_v1 }
 0x33a   : > { %1911 = vmatprep.subr.bf16.mxu0 %v879_v2 }
 0x33d   : > { %1912 = vmatpush3.bf16.msra.mxu0 %v879_v2 }
 0x33e   : > { %1913 = vmatprep.subr.bf16.mxu0 %v880_v38 }
 0x341   : > { %1914 = vmatpush3.bf16.msra.mxu0 %v880_v38 }
 0x342   : > { %1915 = vmatprep.subr.bf16.mxu0 %v881_v20 }
 0x345   : > { %1916 = vmatpush3.bf16.msra.mxu0 %v881_v20 }
 0x348   : > { %1918 = vmatmul.mubr.bf16.vlgmr.msra.gmra.mrb[0].mxu0 %v1684_v21 }
 0x349   : > { %1921 = vmatprep.mubr.bf16.mxu0 %v1685_v40 }
 0x350   : > { %1922 = vmatmul.mubr.bf16.gmra.mrb[4].mxu0 %v1686_v22 }
 0x351   : > { %1925 = vmatprep.mubr.bf16.mxu0 %v1687_v23 }
 0x358   : > { %1926 = vmatmul.mubr.bf16.gmra.mrb[8].mxu0 %v1688_v24 }
 0x359   : > { %1929 = vmatprep.mubr.bf16.mxu0 %v1689_v3 }
 0x360   : > { %1930 = vmatmul.mubr.bf16.gmra.mrb[12].mxu0 %v1690_v4 }
 0x41b   : > { %v1919_v5 = vpop.f32.mrb[0].mxu0 }
 0x41c   : > { %v964_v6 = vpop.f32.mrb[1].mxu0 }
 0x41d   : > { %v1920_v7 = vpop.f32.mrb[2].mxu0 }
 0x41e   : > { %v967_v8 = vpop.f32.mrb[3].mxu0  ;;  %v1032_v45 = vpack.c.bf16 (!%p1691_p10), %v1920_v7, %v1919_v5 }
 0x41f   : > { %v1031_v43 = vpack.c.bf16 (!%p1691_p10), %v967_v8, %v964_v6 }
 0x423   : > { %v1923_v25 = vpop.f32.mrb[4].mxu0 }
 0x424   : > { %v980_v9 = vpop.f32.mrb[5].mxu0 }
 0x425   : > { %v1924_v10 = vpop.f32.mrb[6].mxu0 }
 0x426   : > { %v983_v26 = vpop.f32.mrb[7].mxu0  ;;  %v1034_v30 = vpack.c.bf16 (!%p1691_p10), %v1924_v10, %v1923_v25 }
 0x427   : > { %v1033_v29 = vpack.c.bf16 (!%p1691_p10), %v983_v26, %v980_v9 }
 0x42b   : > { %v2988_v27 = vpop.f32.mrb[8].mxu0 }
 0x42c   : > { %v996_v11 = vpop.f32.mrb[9].mxu0 }
 0x42d   : > { %v2990_v12 = vpop.f32.mrb[10].mxu0 }
 0x42e   : > { %v999_v13 = vpop.f32.mrb[11].mxu0  ;;  %v1036_v32 = vpack.c.bf16 (!%p1691_p10), %v2990_v12, %v2988_v27 }
 0x42f   : > { %v1035_v31 = vpack.c.bf16 (!%p1691_p10), %v999_v13, %v996_v11 }
 0x430   : > { %1030 = sbr.rel (%p1691_p10) target bundleno = 1089 (0x441), region = 112 }
 0x433   : > { %v2992_v14 = vpop.f32.mrb[12].mxu0 }
 0x434   : > { %v2994_v28 = vpop.f32.mrb[13].mxu0 }
 0x435   : > { %v2996_v15 = vpop.f32.mrb[14].mxu0 }
 0x436   : > { %v2998_v16 = vpop.f32.mrb[15].mxu0  ;;  %v1038_v42 = vpack.c.bf16 (!%p1691_p10), %v2996_v15, %v2992_v14 }
 0x437   : > { %s3125_s13 = smov (!%p1040_p11, %s1044_s13), %s1043_s20  ;;  %v1037_v33 = vpack.c.bf16 %v2998_v16, %v2994_v28 }
 0x438   : > { %p1694_p12 = scmp.lt.s32.totalorder %s3125_s13, 0  ;;  %s1050_s14 = sadd.s32 2, %s3125_s13 }
 0x43a   : > { %s3127_s14 = smov (!%p1694_p12, %s1050_s14), %s3125_s13 }
 0x43b   : > { %s1731_s19 = sshll.u32 %s3127_s14, 6 }
 0x43c   : > { %s1057_s29 = scalar_lea.vmem [#allocation2], %s1731_s19 }
 0x43d   : > { %1058 = vst [vmem:[%s1057_s29] sm:$0xff] %v1031_v43  ;;  %1059 = vst [vmem:[%s1057_s29 + $0x8] sm:$0xff] %v1032_v45 }
 0x43e   : > { %1060 = vst [vmem:[%s1057_s29 + $0x10] sm:$0xff] %v1033_v29  ;;  %1061 = vst [vmem:[%s1057_s29 + $0x18] sm:$0xff] %v1034_v30 }
 0x43f   : > { %1062 = vst [vmem:[%s1057_s29 + $0x20] sm:$0xff] %v1035_v31  ;;  %1063 = vst [vmem:[%s1057_s29 + $0x28] sm:$0xff] %v1036_v32 }
 0x440   : > { %1064 = vst [vmem:[%s1057_s29 + $0x30] sm:$0xff] %v1037_v33  ;;  %1065 = vst [vmem:[%s1057_s29 + $0x38] sm:$0xff] %v1038_v42 }
 0x441 PF: > { %v1066_v35 = vmul.f32 0.3, %v964_v6  ;;  %v1067_v37 = vmul.f32 0.3, %v967_v8  ;;  %v2520_v50 = vmov 0.0   ;;  %vm2521_vm1 = vmmov 0  }
 0x442   : > { %1933 = vmatprep.subr.bf16.mxu1 %v2520_v50  ;;  %v1068_v34 = vmul.f32 0.3, %v1919_v5  ;;  %v1069_v51 = vmul.f32 0.3, %v1920_v7  ;;  %1949 = vmatprep.mubr.msk.bf16.mxu1 %vm2521_vm1, %v2520_v50  ;;  %v1070_v36 = vmul.f32 0.3, %v980_v9 }
 0x443   : > { %v1083_v44 = vpack.c.bf16 %v1067_v37, %v1066_v35  ;;  %v1071_v53 = vmul.f32 0.3, %v983_v26  ;;  %v1072_v47 = vmul.f32 0.3, %v1923_v25  ;;  %v1073_v54 = vmul.f32 0.3, %v1924_v10 }
 0x444   : > { %v1084_v52 = vpack.c.bf16 %v1069_v51, %v1068_v34  ;;  %v1074_v49 = vmul.f32 0.3, %v996_v11  ;;  %v1075_v56 = vmul.f32 0.3, %v999_v13  ;;  %v1076_v59 = vmul.f32 0.3, %v2988_v27 }
 0x445   : > { %1934 = vmatpush3.bf16.msra.mxu1 %v1083_v44  ;;  %v1085_v39 = vpack.c.bf16 %v1071_v53, %v1070_v36  ;;  %v1086_v55 = vpack.c.bf16 %v1073_v54, %v1072_v47  ;;  %v1077_v46 = vmul.f32 0.3, %v2990_v12  ;;  %v1078_v41 = vmul.f32 0.3, %v2994_v28  ;;  %v1082_v0 = vld [vmem:[#allocation3] sm:$0xff] }
 0x446   : > { %1935 = vmatprep.subr.bf16.mxu1 %v2520_v50  ;;  %v1087_v57 = vpack.c.bf16 %v1075_v56, %v1074_v49  ;;  %v1079_v62 = vmul.f32 0.3, %v2998_v16  ;;  %v1080_v61 = vmul.f32 0.3, %v2992_v14  ;;  %v1081_v60 = vmul.f32 0.3, %v2996_v15 }
 0x447   : > { %v1088_v48 = vpack.c.bf16 %v1077_v46, %v1076_v59 }
 0x448   : > { %v1089_v58 = vpack.c.bf16 %v1079_v62, %v1078_v41  ;;  %v1090_v63 = vpack.c.bf16 %v1081_v60, %v1080_v61 }
 0x449   : > { %1936 = vmatpush3.bf16.msra.mxu1 %v1084_v52 }
 0x44a   : > { %1937 = vmatprep.subr.bf16.mxu1 %v2520_v50 }
 0x44d   : > { %1938 = vmatpush3.bf16.msra.mxu1 %v1085_v39 }
 0x44e   : > { %1939 = vmatprep.subr.bf16.mxu1 %v2520_v50 }
 0x451   : > { %1940 = vmatpush3.bf16.msra.mxu1 %v1086_v55 }
 0x452   : > { %1941 = vmatprep.subr.bf16.mxu1 %v2520_v50 }
 0x455   : > { %1942 = vmatpush3.bf16.msra.mxu1 %v1087_v57 }
 0x456   : > { %1943 = vmatprep.subr.bf16.mxu1 %v2520_v50 }
 0x459   : > { %1944 = vmatpush3.bf16.msra.mxu1 %v1088_v48 }
 0x45a   : > { %1945 = vmatprep.subr.bf16.mxu1 %v2520_v50 }
 0x45d   : > { %1946 = vmatpush3.bf16.msra.mxu1 %v1089_v58 }
 0x45e   : > { %1947 = vmatprep.subr.bf16.mxu1 %v2520_v50 }
 0x461   : > { %1948 = vmatpush3.bf16.msra.mxu1 %v1090_v63 }
 0x464   : > { %1950 = vmatmul.mubr.bf16.vlgmr.msra.gmra.mrb[0].mxu1 %v2897_v17 }
 0x537   : > { %v1125_v18 = vpop.f32.mrb[0].mxu1 }
 0x538   : > { %v1131_v19 = vadd.f32 %v1125_v18, %v1082_v0  ;;  %v1951_v1 = vpop.f32.mrb[1].mxu1 }
 0x539   : > { %v1128_v2 = vpop.f32.mrb[2].mxu1 }
 0x53a   : > { %1132 = vst [vmem:[#allocation3] sm:$0xff] %v1131_v19  ;;  %v1952_v38 = vpop.f32.mrb[3].mxu1 }
 0x53b PF: > { %p1133_p2 = scmp.eq.s32.totalorder %s2496_s30, 2 }
 0x53c   : > { %v2152_v20 = vld [vmem:[#allocation10] sm:$0xff] (%p1133_p2)   ;;  %v2522_v21 = vmov (%p1133_p2), 0.0   ;;  %v2153_v40 = vld [vmem:[#allocation10 + $0x8] sm:$0xff] (%p1133_p2)   ;;  %vm2523_vm2 = vmmov (%p1133_p2), 0   ;;  %v2154_v17 = vld [vmem:[#allocation10 + $0x10] sm:$0xff] (%p1133_p2)   ;;  %v1470_v39 = vlaneseq (%p1133_p2) }
 0x53d   : > { %1137 = sbr.rel (!%p1133_p2) target bundleno = 2337 (0x921), region = 116  ;;  %1953 = vmatprep.subr.bf16.mxu0 (%p1133_p2), %v2522_v21  ;;  %1973 = vmatprep.subr.bf16.mxu1 (%p1133_p2), %v2522_v21  ;;  %v2160_v22 = vld [vmem:[#allocation13] sm:$0xff] (%p1133_p2)   ;;  %v2155_v23 = vld [vmem:[#allocation10 + $0x18] sm:$0xff] (%p1133_p2)   ;;  %v2161_v24 = vld [vmem:[#allocation13 + $0x8] sm:$0xff] (%p1133_p2)  }
 0x53e   : > { %1954 = vmatpush3.bf16.msra.mxu0 (%p1133_p2), %v2152_v20  ;;  %1969 = vmatprep.mubr.msk.bf16.mxu0 (%p1133_p2), %vm2523_vm2, %v2522_v21  ;;  %v2156_v3 = vld [vmem:[#allocation10 + $0x20] sm:$0xff] (%p1133_p2)   ;;  %v2162_v4 = vld [vmem:[#allocation13 + $0x10] sm:$0xff] (%p1133_p2)   ;;  %v2157_v5 = vld [vmem:[#allocation10 + $0x28] sm:$0xff] (%p1133_p2)   ;;  %v1471_v47 = vand.u32 (%p1133_p2), 127, %v1470_v39 }
 0x53f   : > { %1955 = vmatprep.subr.bf16.mxu0 (%p1133_p2), %v2522_v21  ;;  %1989 = vmatprep.mubr.msk.bf16.mxu1 (%p1133_p2), %vm2523_vm2, %v2522_v21  ;;  %v2163_v6 = vld [vmem:[#allocation13 + $0x18] sm:$0xff] (%p1133_p2)   ;;  %v2158_v7 = vld [vmem:[#allocation10 + $0x30] sm:$0xff] (%p1133_p2)   ;;  %v2164_v8 = vld [vmem:[#allocation13 + $0x20] sm:$0xff] (%p1133_p2)  }
 0x540   : > { %1974 = vmatpush3.bf16.msra.mxu1 (%p1133_p2), %v2160_v22  ;;  %v2159_v25 = vld [vmem:[#allocation10 + $0x38] sm:$0xff] (%p1133_p2)   ;;  %v2165_v10 = vld [vmem:[#allocation13 + $0x28] sm:$0xff] (%p1133_p2)   ;;  %v2167_v11 = vld [vmem:[#allocation13 + $0x38] sm:$0xff] (%p1133_p2)   ;;  %vm1472_vm3 = vcmp.lt.s32.totalorder (%p1133_p2), %v1471_v47, 4 }
 0x541   : > { %1975 = vmatprep.subr.bf16.mxu1 (%p1133_p2), %v2522_v21  ;;  %v1138_v9 = vld [vmem:[#allocation3] sm:$0xff] (%p1133_p2)  ;;  %v2168_v12 = vld [vmem:[#allocation16] sm:$0xff] (%p1133_p2)   ;;  %v2171_v28 = vld [vmem:[#allocation16 + $0x18] sm:$0xff] (%p1133_p2)  }
 0x542   : > { %1956 = vmatpush3.bf16.msra.mxu0 (%p1133_p2), %v2153_v40  ;;  %v1139_v26 = vpack.c.bf16 (%p1133_p2), %v1138_v9, %v1138_v9  ;;  %v2166_v27 = vld [vmem:[#allocation13 + $0x30] sm:$0xff] (%p1133_p2)   ;;  %v2172_v15 = vld [vmem:[#allocation16 + $0x20] sm:$0xff] (%p1133_p2)   ;;  %v1156_v43 = vld [vmem:[#allocation12] sm:$0xff] (%p1133_p2) }
 0x543   : > { %1957 = vmatprep.subr.bf16.mxu0 (%p1133_p2), %v2522_v21  ;;  %v2169_v13 = vld [vmem:[#allocation16 + $0x8] sm:$0xff] (%p1133_p2)   ;;  %v2170_v14 = vld [vmem:[#allocation16 + $0x10] sm:$0xff] (%p1133_p2)   ;;  %v2175_v35 = vld [vmem:[#allocation16 + $0x38] sm:$0xff] (%p1133_p2)  }
 0x544   : > { %1976 = vmatpush3.bf16.msra.mxu1 %v2161_v24  ;;  %v2173_v16 = vld [vmem:[#allocation16 + $0x28] sm:$0xff]   ;;  %v2174_v42 = vld [vmem:[#allocation16 + $0x30] sm:$0xff]   ;;  %v1706_v37 = vld [vmem:[#allocation15] ss:$0 sm:$0xff] }
 0x545   : > { %1977 = vmatprep.subr.bf16.mxu1 %v2522_v21  ;;  %v1715_v54 = vld [vmem:[#allocation18] ss:$0 sm:$0xff] }
 0x546   : > { %1958 = vmatpush3.bf16.msra.mxu0 %v2154_v17 }
 0x547   : > { %1959 = vmatprep.subr.bf16.mxu0 %v2522_v21 }
 0x548   : > { %1978 = vmatpush3.bf16.msra.mxu1 %v2162_v4 }
 0x549   : > { %1979 = vmatprep.subr.bf16.mxu1 %v2522_v21 }
 0x54a   : > { %1960 = vmatpush3.bf16.msra.mxu0 %v2155_v23 }
 0x54b   : > { %1961 = vmatprep.subr.bf16.mxu0 %v2522_v21 }
 0x54c   : > { %1980 = vmatpush3.bf16.msra.mxu1 %v2163_v6 }
 0x54d   : > { %1981 = vmatprep.subr.bf16.mxu1 %v2522_v21 }
 0x54e   : > { %1962 = vmatpush3.bf16.msra.mxu0 %v2156_v3 }
 0x54f   : > { %1963 = vmatprep.subr.bf16.mxu0 %v2522_v21 }
 0x550   : > { %1982 = vmatpush3.bf16.msra.mxu1 %v2164_v8 }
 0x551   : > { %1983 = vmatprep.subr.bf16.mxu1 %v2522_v21 }
 0x552   : > { %1964 = vmatpush3.bf16.msra.mxu0 %v2157_v5 }
 0x553   : > { %1965 = vmatprep.subr.bf16.mxu0 %v2522_v21 }
 0x554   : > { %1984 = vmatpush3.bf16.msra.mxu1 %v2165_v10 }
 0x555   : > { %1985 = vmatprep.subr.bf16.mxu1 %v2522_v21 }
 0x556   : > { %1966 = vmatpush3.bf16.msra.mxu0 %v2158_v7 }
 0x557   : > { %1967 = vmatprep.subr.bf16.mxu0 %v2522_v21 }
 0x558   : > { %1986 = vmatpush3.bf16.msra.mxu1 %v2166_v27 }
 0x559   : > { %1987 = vmatprep.subr.bf16.mxu1 %v2522_v21 }
 0x55a   : > { %1968 = vmatpush3.bf16.msra.mxu0 %v2159_v25 }
 0x55b   : > { %1993 = vmatprep.subr.bf16.mxu0 %v2522_v21 }
 0x55c   : > { %1988 = vmatpush3.bf16.msra.mxu1 %v2167_v11 }
 0x55d   : > { %1970 = vmatmul.mubr.bf16.vlgmr.msra.gmra.mrb[0].mxu0 %v1139_v26 }
 0x55e   : > { %2009 = vmatprep.mubr.msk.bf16.mxu0 %vm2523_vm2, %v2522_v21  ;;  %1994 = vmatpush3.bf16.msra.mxu0 %v2168_v12 }
 0x55f   : > { %1995 = vmatprep.subr.bf16.mxu0 %v2522_v21 }
 0x562   : > { %1996 = vmatpush3.bf16.msra.mxu0 %v2169_v13 }
 0x563   : > { %1997 = vmatprep.subr.bf16.mxu0 %v2522_v21 }
 0x566   : > { %1998 = vmatpush3.bf16.msra.mxu0 %v2170_v14 }
 0x567   : > { %1999 = vmatprep.subr.bf16.mxu0 %v2522_v21 }
 0x56a   : > { %2000 = vmatpush3.bf16.msra.mxu0 %v2171_v28 }
 0x56b   : > { %2001 = vmatprep.subr.bf16.mxu0 %v2522_v21 }
 0x56e   : > { %2002 = vmatpush3.bf16.msra.mxu0 %v2172_v15 }
 0x56f   : > { %2003 = vmatprep.subr.bf16.mxu0 %v2522_v21 }
 0x572   : > { %2004 = vmatpush3.bf16.msra.mxu0 %v2173_v16 }
 0x573   : > { %2005 = vmatprep.subr.bf16.mxu0 %v2522_v21 }
 0x576   : > { %2006 = vmatpush3.bf16.msra.mxu0 %v2174_v42 }
 0x577   : > { %2007 = vmatprep.subr.bf16.mxu0 %v2522_v21 }
 0x57a   : > { %2008 = vmatpush3.bf16.msra.mxu0 %v2175_v35 }
 0x630   : > { %v1239_v45 = vpop.f32.mrb[0].mxu0 }
 0x631   : > { %v1240_v29 = vadd.f32 %v1239_v45, %v1156_v43  ;;  %v1971_v30 = vpop.f32.mrb[1].mxu0 }
 0x632   : > { %v1242_v31 = vpop.f32.mrb[2].mxu0 }
 0x633   : > { %v1245_v32 = vpack.c.bf16 %v1240_v29, %v1240_v29  ;;  %v1972_v33 = vpop.f32.mrb[3].mxu0 }
 0x635   : > { %1990 = vmatmul.mubr.bf16.vlgmr.msra.gmra.mrb[0].mxu1 %v1245_v32 }
 0x708   : > { %v1351_v50 = vpop.f32.mrb[0].mxu1 }
 0x709   : > { %v1352_v34 = vadd.f32 %v1706_v37, %v1351_v50  ;;  %v1991_v51 = vpop.f32.mrb[1].mxu1 }
 0x70a   : > { %v1354_v44 = vpop.f32.mrb[2].mxu1 }
 0x70b   : > { %v1357_v52 = vmax.f32 %v1352_v34, 0.0  ;;  %v1992_v36 = vpop.f32.mrb[3].mxu1 }
 0x70d   : > { %v1358_v53 = vpack.c.bf16 %v1357_v52, %v1357_v52 }
 0x70f   : > { %2010 = vmatmul.mubr.bf16.vlgmr.msra.gmra.mrb[4].mxu0 %v1358_v53 }
 0x7e2   : > { %v1464_v55 = vpop.f32.mrb[4].mxu0 }
 0x7e3   : > { %v1465_v49 = vadd.f32 %v1715_v54, %v1464_v55  ;;  %v2011_v56 = vpop.f32.mrb[5].mxu0 }
 0x7e4   : > { %v1467_v57 = vpop.f32.mrb[6].mxu0 }
 0x7e5   : > { %v2012_v59 = vpop.f32.mrb[7].mxu0  ;;  %v1473_v46 = vsel %vm1472_vm3, %v1465_v49, -1e+30 }
 0x7e6   : > { %1474 = vmax.xlane.f32.xlu0 %v1473_v46 }
 0x873   : > { %v1475_v48 = vpop.xlane.xlu0 %1474 }
 0x874   : > { %v1476_v41 = vsub.f32 %v1473_v46, %v1475_v48 }
 0x876   : > { %v1477_v62 = vmul.f32 1.442695, %v1476_v41 }
 0x878   : > { %2176 = vpow2.f32 %v1477_v62 }
 0x882   : > { %v2177_v58 = vpop.eup %2176 }
 0x883   : > { %1479 = vadd.xlane.f32.xlu0 %v2177_v58 }
 0x910   : > { %v1480_v61 = vpop.xlane.xlu0 %1479 }
 0x911   : > { %2178 = vlog2.f32 %v1480_v61 }
 0x91b   : > { %v2179_v60 = vpop.eup %2178 }
 0x91c   : > { %v1482_v63 = vmul.f32 0.6931472, %v2179_v60 }
 0x91e   : > { %v1483_v0 = vsub.f32 %v1476_v41, %v1482_v63 }
 0x920   : > { %1484 = vst [vmem:[#allocation19] sm:$0xff] %v1483_v0 }
 0x921 PF: > { %s3109_s30 = sadd.s32 4294967295, %s2504_s11   ;;  %s2524_s27 = smov [#allocation19]  }
 0x922   : > { %p3048_p13 = scmp.eq.s32.totalorder %s3109_s30, 2  ;;  %s1492_s21 = sshll.u32 %s2524_s27, 4  ;;  %s1493_s21 = int_to_ptr.vmem [resolvable:$true] %s1492_s21 }
 0x923   : > { %s2432_s22 = scalar_lea.vmem %s1493_s21, 128  ;;  %p2439_p0 = scmp.lt.s32.totalorder %s1493_s21, %s1493_s21 }
 0x924   : > { %p2433_p7 = scmp.ne.s32.totalorder %s1493_s21, %s2432_s22  ;;  %p2440_p1 = scmp.lt.s32.totalorder %s2432_s22, %s2432_s22 }
 0x926   : > { %p2434_p5 = pnand %p2433_p7, %p3048_p13  ;;  %p2441_p4 = por %p2440_p1, %p2439_p0 }
 0x928   : > { %p2435_p3 = pneg %p2434_p5 }
 0x92a   : > { %p2442_p6 = pnand %p2441_p4, %p2435_p3 }
 0x92c   : > { %2445 = shalt.err (!%p2442_p6)
}
 0x92d   : > { %s3111_s18 = sld [smem:[#allocation27_spill]] }
 0x933   : > { %s2446_s9 = scalar_lea.hbm %s3111_s18, 128 }
 0x934   : > { %p2447_p8 = scmp.ne.s32.totalorder %s3111_s18, %s2446_s9  ;;  %p2452_p11 = scmp.lt.u32.totalorder %s2446_s9, %s3111_s18 }
 0x936   : > { %p2448_p9 = pnand %p2447_p8, %p3048_p13 }
 0x938   : > { %p2449_p10 = pneg %p2448_p9 }
 0x93a   : > { %p2454_p12 = pnand %p2452_p11, %p2449_p10 }
 0x93c   : > { %2457 = shalt.err (!%p2454_p12)
}
 0x93d   : > { %2050 = dma.vmem_to_hbm [thread:$0]  (%p3048_p13), %s1493_s21, 128, %s3111_s18, [#allocation6]  }
 0x93e   : > { %2491 = dma.done.wait (%p3048_p13), [#allocation6], 128  }
 0x93f   : > { %2493 = vsyncadd (%p3048_p13), [#allocation6], 4294967168 }
 0x940 PF: > { %s25_s11 = sadd.s32 1, %s2504_s11   ;;  %s3112_s30 = smov %s2500_s10 }
 0x941   : > { %p22_p2 = scmp.ge.s32.totalorder %s25_s11, 5   ;;  %s3113_s10 = smov %s3115_s16 }
 0x943   :  { %24 = sbr.rel (!%p22_p2) target bundleno = 10 (0xa), region = 147 }
 0x94a   :  { %1505 = vsyncpa [#allocation5], 1 }
 0x94b   :  { %1507 = vsyncpa [#allocation5 + $0x1], 1 }
 0x94c   :  { %1508 = vsyncpa [#allocation8], 1 }
 0x94d   :  { %1509 = vsyncpa [#allocation11], 1 }
 0x94e   :  { %1510 = vsyncpa [#allocation14], 1 }
 0x94f   :  { %1511 = vsyncpa [#allocation17], 1 }
 0x950   :  { %1512 = vsyncpa [#allocation6], 1 }
 0x951   :  { %1514 = vsyncpa [#allocation6 + $0x1], 1 }

</bundles_post_ra>
